<compile_context>
chip_gen: v7x
topology: tpu7x:2x2x1
jax: 0.10.0
libtpu: 0.0.40
codegen_flags: <defaults>
</compile_context>

<pallas_src>
import jax
import jax.numpy as jnp
from jax import lax
from jax.experimental import pallas as pl
from jax.experimental.pallas import tpu as pltpu

NUM_TAGS = 4  # len(idx2label) == ['<PAD>', 'starwars', 'poke', 'muppet']


def langid_kernel(x_ref,      # (T, Bt, E)   embedded inputs, time-major (f32)
                  wih_ref,    # (E, 8H)      [fwd W_ih | bwd W_ih]  (matmul dtype)
                  b_ref,      # (1, 8H)      fused b_ih+b_hh, both dirs (f32)
                  whh_ref,    # (H, 8H)      [fwd W_hh | bwd W_hh]  (matmul dtype)
                  wout_ref,   # (2H, NUM_TAGS)
                  bout_ref,   # (1, NUM_TAGS)
                  out_ref):   # (Bt, NUM_TAGS)  softmax probabilities
    T, Bt, E = x_ref.shape
    H = whh_ref.shape[0]
    H4 = 4 * H

    whh = whh_ref[...]                  # stays live across the unrolled loop
    mm_dtype = whh.dtype                # bf16 (default, MXU-native) or f32

    # ---- Hoisted input projection (off the serial path): one MXU matmul
    # computes both directions' gate inputs for all timesteps at once.
    xv = x_ref[...]                                              # (T, Bt, E)
    x2 = jnp.concatenate([xv[t] for t in range(T)], axis=0)      # (T*Bt, E)
    u = jnp.dot(x2.astype(mm_dtype), wih_ref[...],
                preferred_element_type=jnp.float32) + b_ref[...]  # (T*Bt, 8H)

    # Pre-stack per-step gate inputs as [fwd @ t ; bwd @ T-1-t] -> (2Bt, 4H).
    # Static, sublane-aligned slices only (loop is unrolled); no scratch.
    u_steps = [
        jnp.concatenate([u[t * Bt:(t + 1) * Bt, :H4],
                         u[(T - 1 - t) * Bt:(T - t) * Bt, H4:]], axis=0)
        for t in range(T)
    ]

    # Rows [:Bt] carry the forward chain, rows [Bt:] the backward chain.
    is_fwd = lax.broadcasted_iota(jnp.int32, (2 * Bt, 1), 0) < Bt

    h = jnp.zeros((2 * Bt, H), jnp.float32)
    c = jnp.zeros((2 * Bt, H), jnp.float32)

    # ---- Fused fwd/bwd recurrence, fully unrolled (T static & small).
    for t in range(T):
        # Single fused recurrent MXU push for both directions.
        g8 = jnp.dot(h.astype(mm_dtype), whh,
                     preferred_element_type=jnp.float32)          # (2Bt, 8H)
        # Fwd rows want h_f @ whh_f (cols :4H), bwd rows want h_b @ whh_b
        # (cols 4H:); the cross terms are discarded for free.
        g = jnp.where(is_fwd, g8[:, :H4], g8[:, H4:]) + u_steps[t]  # (2Bt, 4H)
        # Full-width EUP: one sigmoid + one tanh over the whole gate slab.
        s = jax.nn.sigmoid(g)
        th = jnp.tanh(g)
        i = s[:, 0 * H:1 * H]        # PyTorch nn.LSTM gate order [i, f, g, o]
        f = s[:, 1 * H:2 * H]
        gg = th[:, 2 * H:3 * H]
        o = s[:, 3 * H:4 * H]
        c = f * c + i * gg
        h = o * jnp.tanh(c)

    # ---- hidden_to_tag on cat([forward_out, backward_out], 1), as a split
    # matmul (avoids an in-kernel cross-lane concatenate).
    h_f = h[:Bt]                      # fwd hidden after last timestep
    h_b = h[Bt:]                      # bwd hidden after processing down to t=0
    wout = wout_ref[...].astype(jnp.float32)
    y = (jnp.dot(h_f, wout[:H, :], preferred_element_type=jnp.float32)
         + jnp.dot(h_b, wout[H:, :], preferred_element_type=jnp.float32)
         + bout_ref[...])                                         # (Bt, NUM_TAGS)

    # F.softmax(y, dim=1)  (the reference names it log_probs but applies softmax)
    y = y - jnp.max(y, axis=1, keepdims=True)
    e = jnp.exp(y)
    out_ref[...] = e / jnp.sum(e, axis=1, keepdims=True)


def init_params(key, vocab_dim, embed_dim, lstm_dim):
    ks = jax.random.split(key, 12)
    H, E = lstm_dim, embed_dim
    s = 0.1
    return {
        "embedding": jax.random.normal(ks[0], (vocab_dim, E), jnp.float32),
        # LSTM weights stored pre-transposed: (in, 4H). Biases = b_ih + b_hh fused.
        "wih_f": s * jax.random.normal(ks[1], (E, 4 * H), jnp.float32),
        "whh_f": s * jax.random.normal(ks[2], (H, 4 * H), jnp.float32),
        "b_f":   s * jax.random.normal(ks[3], (1, 4 * H), jnp.float32),
        "wih_b": s * jax.random.normal(ks[4], (E, 4 * H), jnp.float32),
        "whh_b": s * jax.random.normal(ks[5], (H, 4 * H), jnp.float32),
        "b_b":   s * jax.random.normal(ks[6], (1, 4 * H), jnp.float32),
        # hidden_to_tag: (2H, NUM_TAGS) pre-transposed, bias (1, NUM_TAGS)
        "wout":  s * jax.random.normal(ks[7], (2 * H, NUM_TAGS), jnp.float32),
        "bout":  s * jax.random.normal(ks[8], (1, NUM_TAGS), jnp.float32),
    }


def langid_forward(token_ids, params, *, batch_tile=8, use_bf16_matmul=True):
    """token_ids: (B, T) int32. Returns softmax probs (B, NUM_TAGS).

    batch_tile: per-grid-step batch (multiple of 8).  Use batch_tile >= B for a
    single tile (best on 1-TC v5e/v6e); use ~B/2 so the "parallel" batch grid
    axis shards across v7x's two TensorCores.
    """
    B, T = token_ids.shape
    E = params["embedding"].shape[1]
    H = params["whh_f"].shape[0]
    assert batch_tile % 8 == 0, "batch_tile must be a multiple of 8 (sublane)"

    # Pad batch up to a multiple of batch_tile (padded rows computed & dropped).
    B_pad = ((B + batch_tile - 1) // batch_tile) * batch_tile
    if B_pad != B:
        token_ids = jnp.pad(token_ids, ((0, B_pad - B), (0, 0)))

    # Embedding lookup (row gather) in plain JAX glue; time-major layout.
    emb = params["embedding"][token_ids].astype(jnp.float32)     # (B_pad, T, E)
    x = jnp.transpose(emb, (1, 0, 2))                            # (T, B_pad, E)

    # Fuse both directions' weights/biases: columns [fwd 4H | bwd 4H].
    wih = jnp.concatenate([params["wih_f"], params["wih_b"]], axis=1)  # (E, 8H)
    whh = jnp.concatenate([params["whh_f"], params["whh_b"]], axis=1)  # (H, 8H)
    b = jnp.concatenate([params["b_f"], params["b_b"]], axis=1)        # (1, 8H)

    # bf16 matmul operands (MXU-native on v5e, v6e, v7x); accumulation and all
    # gate/elementwise math stay f32 in-kernel.
    mm_dtype = jnp.bfloat16 if use_bf16_matmul else jnp.float32

    grid = (B_pad // batch_tile,)
    probs = pl.pallas_call(
        langid_kernel,
        out_shape=jax.ShapeDtypeStruct((B_pad, NUM_TAGS), jnp.float32),
        grid=grid,
        in_specs=[
            pl.BlockSpec((T, batch_tile, E), lambda i: (0, i, 0)),
            pl.BlockSpec((E, 8 * H), lambda i: (0, 0)),
            pl.BlockSpec((1, 8 * H), lambda i: (0, 0)),
            pl.BlockSpec((H, 8 * H), lambda i: (0, 0)),
            pl.BlockSpec((2 * H, NUM_TAGS), lambda i: (0, 0)),
            pl.BlockSpec((1, NUM_TAGS), lambda i: (0, 0)),
        ],
        out_specs=pl.BlockSpec((batch_tile, NUM_TAGS), lambda i: (i, 0)),
        compiler_params=pltpu.CompilerParams(
            dimension_semantics=("parallel",)),
    )(x, wih.astype(mm_dtype), b, whh.astype(mm_dtype),
      params["wout"], params["bout"])
    return probs[:B]


# Pure-JAX f32 reference (same math as the PyTorch module, no Pallas).
def langid_reference(token_ids, params):
    H = params["whh_f"].shape[0]
    emb = params["embedding"][token_ids].astype(jnp.float32)     # (B, T, E)
    B, T, E = emb.shape
    hp = lax.Precision.HIGHEST

    def cell(xt, h, c, wih, whh, b):
        gates = (jnp.dot(xt, wih, precision=hp)
                 + jnp.dot(h, whh, precision=hp) + b)
        i = jax.nn.sigmoid(gates[:, 0 * H:1 * H])
        f = jax.nn.sigmoid(gates[:, 1 * H:2 * H])
        g = jnp.tanh(gates[:, 2 * H:3 * H])
        o = jax.nn.sigmoid(gates[:, 3 * H:4 * H])
        c = f * c + i * g
        return o * jnp.tanh(c), c

    h = c = jnp.zeros((B, H), jnp.float32)
    for t in range(T):
        h, c = cell(emb[:, t], h, c, params["wih_f"], params["whh_f"], params["b_f"])
    h_fwd = h
    h = c = jnp.zeros((B, H), jnp.float32)
    for t in range(T - 1, -1, -1):
        h, c = cell(emb[:, t], h, c, params["wih_b"], params["whh_b"], params["b_b"])
    h_bwd = h
    y = (jnp.dot(jnp.concatenate([h_fwd, h_bwd], axis=1), params["wout"], precision=hp)
         + params["bout"])
    return jax.nn.softmax(y, axis=1)


if __name__ == "__main__":
    # Small shapes consistent with the module; B=16 with batch_tile=8 exercises
    # the (parallel) batch grid (2 tiles -> both v7x TensorCores; a 2-step
    # serial loop on v5e/v6e).
    B, T, E, H, V = 16, 8, 32, 32, 16

    key = jax.random.PRNGKey(0)
    k_param, k_tok = jax.random.split(key)
    params = init_params(k_param, vocab_dim=V, embed_dim=E, lstm_dim=H)
    token_ids = jax.random.randint(k_tok, (B, T), 0, V, dtype=jnp.int32)

    probs = jax.block_until_ready(langid_forward(token_ids, params, batch_tile=8))
    ref = jax.block_until_ready(langid_reference(token_ids, params))

    assert probs.shape == (B, NUM_TAGS)
    assert jnp.allclose(jnp.sum(probs, axis=1), 1.0, atol=1e-5)
    # Tolerance accounts for bf16 matmul operands (f32 accumulation/elementwise).
    assert jnp.allclose(probs, ref, atol=2e-2, rtol=2e-2)

    print("KERNEL_OK")
</pallas_src>

<mosaic_0001>
module attributes {stable_mosaic.version = 11 : i64} {
  func.func @langid_kernel(%arg0: i32, %arg1: memref<8x8x32xf32, #tpu.memory_space<vmem>>, %arg2: memref<32x256xbf16, #tpu.memory_space<vmem>>, %arg3: memref<1x256xf32, #tpu.memory_space<vmem>>, %arg4: memref<32x256xbf16, #tpu.memory_space<vmem>>, %arg5: memref<64x4xf32, #tpu.memory_space<vmem>>, %arg6: memref<1x4xf32, #tpu.memory_space<vmem>>, %arg7: memref<8x4xf32, #tpu.memory_space<vmem>>) attributes {dimension_semantics = [#tpu.dimension_semantics<parallel>], iteration_bounds = array<i64: 2>, scalar_prefetch = 0 : i64, scratch_operands = 0 : i64, tpu.core_type = #tpu.core_type<tc>, window_params = [{transform_indices = @transform_0, window_bounds = array<i64: 8, 8, 32>}, {pipeline_mode = #tpu.pipeline_mode<synchronous>, transform_indices = @transform_1, window_bounds = array<i64: 32, 256>}, {pipeline_mode = #tpu.pipeline_mode<synchronous>, transform_indices = @transform_2, window_bounds = array<i64: 1, 256>}, {pipeline_mode = #tpu.pipeline_mode<synchronous>, transform_indices = @transform_3, window_bounds = array<i64: 32, 256>}, {pipeline_mode = #tpu.pipeline_mode<synchronous>, transform_indices = @transform_4, window_bounds = array<i64: 64, 4>}, {pipeline_mode = #tpu.pipeline_mode<synchronous>, transform_indices = @transform_5, window_bounds = array<i64: 1, 4>}, {transform_indices = @transform_6, window_bounds = array<i64: 8, 4>}]} {
    %c0 = arith.constant 0 : index
    %c0_0 = arith.constant 0 : index
    %0 = vector.load %arg4[%c0, %c0_0] : memref<32x256xbf16, #tpu.memory_space<vmem>>, vector<32x256xbf16>
    %c0_1 = arith.constant 0 : index
    %c0_2 = arith.constant 0 : index
    %c0_3 = arith.constant 0 : index
    %1 = vector.load %arg1[%c0_1, %c0_2, %c0_3] : memref<8x8x32xf32, #tpu.memory_space<vmem>>, vector<8x8x32xf32>
    %2 = vector.extract_strided_slice %1 {offsets = [0, 0, 0], sizes = [1, 8, 32], strides = [1, 1, 1]} : vector<8x8x32xf32> to vector<1x8x32xf32>
    %3 = vector.shape_cast %2 : vector<1x8x32xf32> to vector<8x32xf32>
    %4 = vector.extract_strided_slice %1 {offsets = [1, 0, 0], sizes = [1, 8, 32], strides = [1, 1, 1]} : vector<8x8x32xf32> to vector<1x8x32xf32>
    %5 = vector.shape_cast %4 : vector<1x8x32xf32> to vector<8x32xf32>
    %6 = vector.extract_strided_slice %1 {offsets = [2, 0, 0], sizes = [1, 8, 32], strides = [1, 1, 1]} : vector<8x8x32xf32> to vector<1x8x32xf32>
    %7 = vector.shape_cast %6 : vector<1x8x32xf32> to vector<8x32xf32>
    %8 = vector.extract_strided_slice %1 {offsets = [3, 0, 0], sizes = [1, 8, 32], strides = [1, 1, 1]} : vector<8x8x32xf32> to vector<1x8x32xf32>
    %9 = vector.shape_cast %8 : vector<1x8x32xf32> to vector<8x32xf32>
    %10 = vector.extract_strided_slice %1 {offsets = [4, 0, 0], sizes = [1, 8, 32], strides = [1, 1, 1]} : vector<8x8x32xf32> to vector<1x8x32xf32>
    %11 = vector.shape_cast %10 : vector<1x8x32xf32> to vector<8x32xf32>
    %12 = vector.extract_strided_slice %1 {offsets = [5, 0, 0], sizes = [1, 8, 32], strides = [1, 1, 1]} : vector<8x8x32xf32> to vector<1x8x32xf32>
    %13 = vector.shape_cast %12 : vector<1x8x32xf32> to vector<8x32xf32>
    %14 = vector.extract_strided_slice %1 {offsets = [6, 0, 0], sizes = [1, 8, 32], strides = [1, 1, 1]} : vector<8x8x32xf32> to vector<1x8x32xf32>
    %15 = vector.shape_cast %14 : vector<1x8x32xf32> to vector<8x32xf32>
    %16 = vector.extract_strided_slice %1 {offsets = [7, 0, 0], sizes = [1, 8, 32], strides = [1, 1, 1]} : vector<8x8x32xf32> to vector<1x8x32xf32>
    %17 = vector.shape_cast %16 : vector<1x8x32xf32> to vector<8x32xf32>
    %18 = tpu.concatenate %3, %5, %7, %9, %11, %13, %15, %17 in 0 : vector<8x32xf32>, vector<8x32xf32>, vector<8x32xf32>, vector<8x32xf32>, vector<8x32xf32>, vector<8x32xf32>, vector<8x32xf32>, vector<8x32xf32> -> vector<64x32xf32>
    %19 = arith.truncf %18 : vector<64x32xf32> to vector<64x32xbf16>
    %c0_4 = arith.constant 0 : index
    %c0_5 = arith.constant 0 : index
    %20 = vector.load %arg2[%c0_4, %c0_5] : memref<32x256xbf16, #tpu.memory_space<vmem>>, vector<32x256xbf16>
    %cst = arith.constant dense<0.000000e+00> : vector<64x256xf32>
    %21 = tpu.matmul %19, %20, %cst {dimension_numbers = #tpu.dot_dimension_numbers<[1], [0], [0], [1], [0, 0, 1, 1], [], []>} : vector<64x32xbf16>, vector<32x256xbf16>, vector<64x256xf32> -> vector<64x256xf32>
    %c0_6 = arith.constant 0 : index
    %c0_7 = arith.constant 0 : index
    %22 = vector.load %arg3[%c0_6, %c0_7] : memref<1x256xf32, #tpu.memory_space<vmem>>, vector<1x256xf32>
    %23 = vector.broadcast %22 : vector<1x256xf32> to vector<64x256xf32>
    %24 = arith.addf %21, %23 : vector<64x256xf32>
    %25 = vector.extract_strided_slice %24 {offsets = [0, 0], sizes = [8, 128], strides = [1, 1]} : vector<64x256xf32> to vector<8x128xf32>
    %26 = vector.extract_strided_slice %24 {offsets = [56, 128], sizes = [8, 128], strides = [1, 1]} : vector<64x256xf32> to vector<8x128xf32>
    %27 = tpu.concatenate %25, %26 in 0 : vector<8x128xf32>, vector<8x128xf32> -> vector<16x128xf32>
    %28 = vector.extract_strided_slice %24 {offsets = [8, 0], sizes = [8, 128], strides = [1, 1]} : vector<64x256xf32> to vector<8x128xf32>
    %29 = vector.extract_strided_slice %24 {offsets = [48, 128], sizes = [8, 128], strides = [1, 1]} : vector<64x256xf32> to vector<8x128xf32>
    %30 = tpu.concatenate %28, %29 in 0 : vector<8x128xf32>, vector<8x128xf32> -> vector<16x128xf32>
    %31 = vector.extract_strided_slice %24 {offsets = [16, 0], sizes = [8, 128], strides = [1, 1]} : vector<64x256xf32> to vector<8x128xf32>
    %32 = vector.extract_strided_slice %24 {offsets = [40, 128], sizes = [8, 128], strides = [1, 1]} : vector<64x256xf32> to vector<8x128xf32>
    %33 = tpu.concatenate %31, %32 in 0 : vector<8x128xf32>, vector<8x128xf32> -> vector<16x128xf32>
    %34 = vector.extract_strided_slice %24 {offsets = [24, 0], sizes = [8, 128], strides = [1, 1]} : vector<64x256xf32> to vector<8x128xf32>
    %35 = vector.extract_strided_slice %24 {offsets = [32, 128], sizes = [8, 128], strides = [1, 1]} : vector<64x256xf32> to vector<8x128xf32>
    %36 = tpu.concatenate %34, %35 in 0 : vector<8x128xf32>, vector<8x128xf32> -> vector<16x128xf32>
    %37 = vector.extract_strided_slice %24 {offsets = [32, 0], sizes = [8, 128], strides = [1, 1]} : vector<64x256xf32> to vector<8x128xf32>
    %38 = vector.extract_strided_slice %24 {offsets = [24, 128], sizes = [8, 128], strides = [1, 1]} : vector<64x256xf32> to vector<8x128xf32>
    %39 = tpu.concatenate %37, %38 in 0 : vector<8x128xf32>, vector<8x128xf32> -> vector<16x128xf32>
    %40 = vector.extract_strided_slice %24 {offsets = [40, 0], sizes = [8, 128], strides = [1, 1]} : vector<64x256xf32> to vector<8x128xf32>
    %41 = vector.extract_strided_slice %24 {offsets = [16, 128], sizes = [8, 128], strides = [1, 1]} : vector<64x256xf32> to vector<8x128xf32>
    %42 = tpu.concatenate %40, %41 in 0 : vector<8x128xf32>, vector<8x128xf32> -> vector<16x128xf32>
    %43 = vector.extract_strided_slice %24 {offsets = [48, 0], sizes = [8, 128], strides = [1, 1]} : vector<64x256xf32> to vector<8x128xf32>
    %44 = vector.extract_strided_slice %24 {offsets = [8, 128], sizes = [8, 128], strides = [1, 1]} : vector<64x256xf32> to vector<8x128xf32>
    %45 = tpu.concatenate %43, %44 in 0 : vector<8x128xf32>, vector<8x128xf32> -> vector<16x128xf32>
    %46 = vector.extract_strided_slice %24 {offsets = [56, 0], sizes = [8, 128], strides = [1, 1]} : vector<64x256xf32> to vector<8x128xf32>
    %47 = vector.extract_strided_slice %24 {offsets = [0, 128], sizes = [8, 128], strides = [1, 1]} : vector<64x256xf32> to vector<8x128xf32>
    %48 = tpu.concatenate %46, %47 in 0 : vector<8x128xf32>, vector<8x128xf32> -> vector<16x128xf32>
    %49 = tpu.iota {dimensions = array<i32: 0>} : vector<16x1xi32>
    %c8_i32 = arith.constant 8 : i32
    %50 = vector.broadcast %c8_i32 : i32 to vector<16x1xi32>
    %51 = arith.cmpi slt, %49, %50 : vector<16x1xi32>
    %cst_8 = arith.constant 0.000000e+00 : f32
    %52 = vector.broadcast %cst_8 : f32 to vector<16x32xf32>
    %cst_9 = arith.constant 0.000000e+00 : f32
    %53 = vector.broadcast %cst_9 : f32 to vector<16x32xf32>
    %54 = arith.truncf %52 : vector<16x32xf32> to vector<16x32xbf16>
    %cst_10 = arith.constant dense<0.000000e+00> : vector<16x256xf32>
    %55 = tpu.matmul %54, %0, %cst_10 {dimension_numbers = #tpu.dot_dimension_numbers<[1], [0], [0], [1], [0, 0, 1, 1], [], []>} : vector<16x32xbf16>, vector<32x256xbf16>, vector<16x256xf32> -> vector<16x256xf32>
    %56 = vector.extract_strided_slice %55 {offsets = [0, 0], sizes = [16, 128], strides = [1, 1]} : vector<16x256xf32> to vector<16x128xf32>
    %57 = vector.extract_strided_slice %55 {offsets = [0, 128], sizes = [16, 128], strides = [1, 1]} : vector<16x256xf32> to vector<16x128xf32>
    %58 = vector.shape_cast %51 : vector<16x1xi1> to vector<16x1xi1>
    %59 = vector.broadcast %58 : vector<16x1xi1> to vector<16x128xi1>
    %60 = arith.select %59, %56, %57 : vector<16x128xi1>, vector<16x128xf32>
    %61 = arith.addf %60, %27 : vector<16x128xf32>
    %62 = arith.negf %61 : vector<16x128xf32>
    %63 = math.exp %62 : vector<16x128xf32>
    %cst_11 = arith.constant 1.000000e+00 : f32
    %64 = vector.broadcast %cst_11 : f32 to vector<16x128xf32>
    %65 = arith.addf %64, %63 : vector<16x128xf32>
    %66 = arith.divf %64, %65 : vector<16x128xf32>
    %67 = math.tanh %61 : vector<16x128xf32>
    %68 = vector.extract_strided_slice %66 {offsets = [0, 0], sizes = [16, 32], strides = [1, 1]} : vector<16x128xf32> to vector<16x32xf32>
    %69 = vector.extract_strided_slice %66 {offsets = [0, 32], sizes = [16, 32], strides = [1, 1]} : vector<16x128xf32> to vector<16x32xf32>
    %70 = vector.extract_strided_slice %67 {offsets = [0, 64], sizes = [16, 32], strides = [1, 1]} : vector<16x128xf32> to vector<16x32xf32>
    %71 = vector.extract_strided_slice %66 {offsets = [0, 96], sizes = [16, 32], strides = [1, 1]} : vector<16x128xf32> to vector<16x32xf32>
    %72 = arith.mulf %69, %53 : vector<16x32xf32>
    %73 = arith.mulf %68, %70 : vector<16x32xf32>
    %74 = arith.addf %72, %73 : vector<16x32xf32>
    %75 = math.tanh %74 : vector<16x32xf32>
    %76 = arith.mulf %71, %75 : vector<16x32xf32>
    %77 = arith.truncf %76 : vector<16x32xf32> to vector<16x32xbf16>
    %cst_12 = arith.constant dense<0.000000e+00> : vector<16x256xf32>
    %78 = tpu.matmul %77, %0, %cst_12 {dimension_numbers = #tpu.dot_dimension_numbers<[1], [0], [0], [1], [0, 0, 1, 1], [], []>} : vector<16x32xbf16>, vector<32x256xbf16>, vector<16x256xf32> -> vector<16x256xf32>
    %79 = vector.extract_strided_slice %78 {offsets = [0, 0], sizes = [16, 128], strides = [1, 1]} : vector<16x256xf32> to vector<16x128xf32>
    %80 = vector.extract_strided_slice %78 {offsets = [0, 128], sizes = [16, 128], strides = [1, 1]} : vector<16x256xf32> to vector<16x128xf32>
    %81 = vector.shape_cast %51 : vector<16x1xi1> to vector<16x1xi1>
    %82 = vector.broadcast %81 : vector<16x1xi1> to vector<16x128xi1>
    %83 = arith.select %82, %79, %80 : vector<16x128xi1>, vector<16x128xf32>
    %84 = arith.addf %83, %30 : vector<16x128xf32>
    %85 = arith.negf %84 : vector<16x128xf32>
    %86 = math.exp %85 : vector<16x128xf32>
    %cst_13 = arith.constant 1.000000e+00 : f32
    %87 = vector.broadcast %cst_13 : f32 to vector<16x128xf32>
    %88 = arith.addf %87, %86 : vector<16x128xf32>
    %89 = arith.divf %87, %88 : vector<16x128xf32>
    %90 = math.tanh %84 : vector<16x128xf32>
    %91 = vector.extract_strided_slice %89 {offsets = [0, 0], sizes = [16, 32], strides = [1, 1]} : vector<16x128xf32> to vector<16x32xf32>
    %92 = vector.extract_strided_slice %89 {offsets = [0, 32], sizes = [16, 32], strides = [1, 1]} : vector<16x128xf32> to vector<16x32xf32>
    %93 = vector.extract_strided_slice %90 {offsets = [0, 64], sizes = [16, 32], strides = [1, 1]} : vector<16x128xf32> to vector<16x32xf32>
    %94 = vector.extract_strided_slice %89 {offsets = [0, 96], sizes = [16, 32], strides = [1, 1]} : vector<16x128xf32> to vector<16x32xf32>
    %95 = arith.mulf %92, %74 : vector<16x32xf32>
    %96 = arith.mulf %91, %93 : vector<16x32xf32>
    %97 = arith.addf %95, %96 : vector<16x32xf32>
    %98 = math.tanh %97 : vector<16x32xf32>
    %99 = arith.mulf %94, %98 : vector<16x32xf32>
    %100 = arith.truncf %99 : vector<16x32xf32> to vector<16x32xbf16>
    %cst_14 = arith.constant dense<0.000000e+00> : vector<16x256xf32>
    %101 = tpu.matmul %100, %0, %cst_14 {dimension_numbers = #tpu.dot_dimension_numbers<[1], [0], [0], [1], [0, 0, 1, 1], [], []>} : vector<16x32xbf16>, vector<32x256xbf16>, vector<16x256xf32> -> vector<16x256xf32>
    %102 = vector.extract_strided_slice %101 {offsets = [0, 0], sizes = [16, 128], strides = [1, 1]} : vector<16x256xf32> to vector<16x128xf32>
    %103 = vector.extract_strided_slice %101 {offsets = [0, 128], sizes = [16, 128], strides = [1, 1]} : vector<16x256xf32> to vector<16x128xf32>
    %104 = vector.shape_cast %51 : vector<16x1xi1> to vector<16x1xi1>
    %105 = vector.broadcast %104 : vector<16x1xi1> to vector<16x128xi1>
    %106 = arith.select %105, %102, %103 : vector<16x128xi1>, vector<16x128xf32>
    %107 = arith.addf %106, %33 : vector<16x128xf32>
    %108 = arith.negf %107 : vector<16x128xf32>
    %109 = math.exp %108 : vector<16x128xf32>
    %cst_15 = arith.constant 1.000000e+00 : f32
    %110 = vector.broadcast %cst_15 : f32 to vector<16x128xf32>
    %111 = arith.addf %110, %109 : vector<16x128xf32>
    %112 = arith.divf %110, %111 : vector<16x128xf32>
    %113 = math.tanh %107 : vector<16x128xf32>
    %114 = vector.extract_strided_slice %112 {offsets = [0, 0], sizes = [16, 32], strides = [1, 1]} : vector<16x128xf32> to vector<16x32xf32>
    %115 = vector.extract_strided_slice %112 {offsets = [0, 32], sizes = [16, 32], strides = [1, 1]} : vector<16x128xf32> to vector<16x32xf32>
    %116 = vector.extract_strided_slice %113 {offsets = [0, 64], sizes = [16, 32], strides = [1, 1]} : vector<16x128xf32> to vector<16x32xf32>
    %117 = vector.extract_strided_slice %112 {offsets = [0, 96], sizes = [16, 32], strides = [1, 1]} : vector<16x128xf32> to vector<16x32xf32>
    %118 = arith.mulf %115, %97 : vector<16x32xf32>
    %119 = arith.mulf %114, %116 : vector<16x32xf32>
    %120 = arith.addf %118, %119 : vector<16x32xf32>
    %121 = math.tanh %120 : vector<16x32xf32>
    %122 = arith.mulf %117, %121 : vector<16x32xf32>
    %123 = arith.truncf %122 : vector<16x32xf32> to vector<16x32xbf16>
    %cst_16 = arith.constant dense<0.000000e+00> : vector<16x256xf32>
    %124 = tpu.matmul %123, %0, %cst_16 {dimension_numbers = #tpu.dot_dimension_numbers<[1], [0], [0], [1], [0, 0, 1, 1], [], []>} : vector<16x32xbf16>, vector<32x256xbf16>, vector<16x256xf32> -> vector<16x256xf32>
    %125 = vector.extract_strided_slice %124 {offsets = [0, 0], sizes = [16, 128], strides = [1, 1]} : vector<16x256xf32> to vector<16x128xf32>
    %126 = vector.extract_strided_slice %124 {offsets = [0, 128], sizes = [16, 128], strides = [1, 1]} : vector<16x256xf32> to vector<16x128xf32>
    %127 = vector.shape_cast %51 : vector<16x1xi1> to vector<16x1xi1>
    %128 = vector.broadcast %127 : vector<16x1xi1> to vector<16x128xi1>
    %129 = arith.select %128, %125, %126 : vector<16x128xi1>, vector<16x128xf32>
    %130 = arith.addf %129, %36 : vector<16x128xf32>
    %131 = arith.negf %130 : vector<16x128xf32>
    %132 = math.exp %131 : vector<16x128xf32>
    %cst_17 = arith.constant 1.000000e+00 : f32
    %133 = vector.broadcast %cst_17 : f32 to vector<16x128xf32>
    %134 = arith.addf %133, %132 : vector<16x128xf32>
    %135 = arith.divf %133, %134 : vector<16x128xf32>
    %136 = math.tanh %130 : vector<16x128xf32>
    %137 = vector.extract_strided_slice %135 {offsets = [0, 0], sizes = [16, 32], strides = [1, 1]} : vector<16x128xf32> to vector<16x32xf32>
    %138 = vector.extract_strided_slice %135 {offsets = [0, 32], sizes = [16, 32], strides = [1, 1]} : vector<16x128xf32> to vector<16x32xf32>
    %139 = vector.extract_strided_slice %136 {offsets = [0, 64], sizes = [16, 32], strides = [1, 1]} : vector<16x128xf32> to vector<16x32xf32>
    %140 = vector.extract_strided_slice %135 {offsets = [0, 96], sizes = [16, 32], strides = [1, 1]} : vector<16x128xf32> to vector<16x32xf32>
    %141 = arith.mulf %138, %120 : vector<16x32xf32>
    %142 = arith.mulf %137, %139 : vector<16x32xf32>
    %143 = arith.addf %141, %142 : vector<16x32xf32>
    %144 = math.tanh %143 : vector<16x32xf32>
    %145 = arith.mulf %140, %144 : vector<16x32xf32>
    %146 = arith.truncf %145 : vector<16x32xf32> to vector<16x32xbf16>
    %cst_18 = arith.constant dense<0.000000e+00> : vector<16x256xf32>
    %147 = tpu.matmul %146, %0, %cst_18 {dimension_numbers = #tpu.dot_dimension_numbers<[1], [0], [0], [1], [0, 0, 1, 1], [], []>} : vector<16x32xbf16>, vector<32x256xbf16>, vector<16x256xf32> -> vector<16x256xf32>
    %148 = vector.extract_strided_slice %147 {offsets = [0, 0], sizes = [16, 128], strides = [1, 1]} : vector<16x256xf32> to vector<16x128xf32>
    %149 = vector.extract_strided_slice %147 {offsets = [0, 128], sizes = [16, 128], strides = [1, 1]} : vector<16x256xf32> to vector<16x128xf32>
    %150 = vector.shape_cast %51 : vector<16x1xi1> to vector<16x1xi1>
    %151 = vector.broadcast %150 : vector<16x1xi1> to vector<16x128xi1>
    %152 = arith.select %151, %148, %149 : vector<16x128xi1>, vector<16x128xf32>
    %153 = arith.addf %152, %39 : vector<16x128xf32>
    %154 = arith.negf %153 : vector<16x128xf32>
    %155 = math.exp %154 : vector<16x128xf32>
    %cst_19 = arith.constant 1.000000e+00 : f32
    %156 = vector.broadcast %cst_19 : f32 to vector<16x128xf32>
    %157 = arith.addf %156, %155 : vector<16x128xf32>
    %158 = arith.divf %156, %157 : vector<16x128xf32>
    %159 = math.tanh %153 : vector<16x128xf32>
    %160 = vector.extract_strided_slice %158 {offsets = [0, 0], sizes = [16, 32], strides = [1, 1]} : vector<16x128xf32> to vector<16x32xf32>
    %161 = vector.extract_strided_slice %158 {offsets = [0, 32], sizes = [16, 32], strides = [1, 1]} : vector<16x128xf32> to vector<16x32xf32>
    %162 = vector.extract_strided_slice %159 {offsets = [0, 64], sizes = [16, 32], strides = [1, 1]} : vector<16x128xf32> to vector<16x32xf32>
    %163 = vector.extract_strided_slice %158 {offsets = [0, 96], sizes = [16, 32], strides = [1, 1]} : vector<16x128xf32> to vector<16x32xf32>
    %164 = arith.mulf %161, %143 : vector<16x32xf32>
    %165 = arith.mulf %160, %162 : vector<16x32xf32>
    %166 = arith.addf %164, %165 : vector<16x32xf32>
    %167 = math.tanh %166 : vector<16x32xf32>
    %168 = arith.mulf %163, %167 : vector<16x32xf32>
    %169 = arith.truncf %168 : vector<16x32xf32> to vector<16x32xbf16>
    %cst_20 = arith.constant dense<0.000000e+00> : vector<16x256xf32>
    %170 = tpu.matmul %169, %0, %cst_20 {dimension_numbers = #tpu.dot_dimension_numbers<[1], [0], [0], [1], [0, 0, 1, 1], [], []>} : vector<16x32xbf16>, vector<32x256xbf16>, vector<16x256xf32> -> vector<16x256xf32>
    %171 = vector.extract_strided_slice %170 {offsets = [0, 0], sizes = [16, 128], strides = [1, 1]} : vector<16x256xf32> to vector<16x128xf32>
    %172 = vector.extract_strided_slice %170 {offsets = [0, 128], sizes = [16, 128], strides = [1, 1]} : vector<16x256xf32> to vector<16x128xf32>
    %173 = vector.shape_cast %51 : vector<16x1xi1> to vector<16x1xi1>
    %174 = vector.broadcast %173 : vector<16x1xi1> to vector<16x128xi1>
    %175 = arith.select %174, %171, %172 : vector<16x128xi1>, vector<16x128xf32>
    %176 = arith.addf %175, %42 : vector<16x128xf32>
    %177 = arith.negf %176 : vector<16x128xf32>
    %178 = math.exp %177 : vector<16x128xf32>
    %cst_21 = arith.constant 1.000000e+00 : f32
    %179 = vector.broadcast %cst_21 : f32 to vector<16x128xf32>
    %180 = arith.addf %179, %178 : vector<16x128xf32>
    %181 = arith.divf %179, %180 : vector<16x128xf32>
    %182 = math.tanh %176 : vector<16x128xf32>
    %183 = vector.extract_strided_slice %181 {offsets = [0, 0], sizes = [16, 32], strides = [1, 1]} : vector<16x128xf32> to vector<16x32xf32>
    %184 = vector.extract_strided_slice %181 {offsets = [0, 32], sizes = [16, 32], strides = [1, 1]} : vector<16x128xf32> to vector<16x32xf32>
    %185 = vector.extract_strided_slice %182 {offsets = [0, 64], sizes = [16, 32], strides = [1, 1]} : vector<16x128xf32> to vector<16x32xf32>
    %186 = vector.extract_strided_slice %181 {offsets = [0, 96], sizes = [16, 32], strides = [1, 1]} : vector<16x128xf32> to vector<16x32xf32>
    %187 = arith.mulf %184, %166 : vector<16x32xf32>
    %188 = arith.mulf %183, %185 : vector<16x32xf32>
    %189 = arith.addf %187, %188 : vector<16x32xf32>
    %190 = math.tanh %189 : vector<16x32xf32>
    %191 = arith.mulf %186, %190 : vector<16x32xf32>
    %192 = arith.truncf %191 : vector<16x32xf32> to vector<16x32xbf16>
    %cst_22 = arith.constant dense<0.000000e+00> : vector<16x256xf32>
    %193 = tpu.matmul %192, %0, %cst_22 {dimension_numbers = #tpu.dot_dimension_numbers<[1], [0], [0], [1], [0, 0, 1, 1], [], []>} : vector<16x32xbf16>, vector<32x256xbf16>, vector<16x256xf32> -> vector<16x256xf32>
    %194 = vector.extract_strided_slice %193 {offsets = [0, 0], sizes = [16, 128], strides = [1, 1]} : vector<16x256xf32> to vector<16x128xf32>
    %195 = vector.extract_strided_slice %193 {offsets = [0, 128], sizes = [16, 128], strides = [1, 1]} : vector<16x256xf32> to vector<16x128xf32>
    %196 = vector.shape_cast %51 : vector<16x1xi1> to vector<16x1xi1>
    %197 = vector.broadcast %196 : vector<16x1xi1> to vector<16x128xi1>
    %198 = arith.select %197, %194, %195 : vector<16x128xi1>, vector<16x128xf32>
    %199 = arith.addf %198, %45 : vector<16x128xf32>
    %200 = arith.negf %199 : vector<16x128xf32>
    %201 = math.exp %200 : vector<16x128xf32>
    %cst_23 = arith.constant 1.000000e+00 : f32
    %202 = vector.broadcast %cst_23 : f32 to vector<16x128xf32>
    %203 = arith.addf %202, %201 : vector<16x128xf32>
    %204 = arith.divf %202, %203 : vector<16x128xf32>
    %205 = math.tanh %199 : vector<16x128xf32>
    %206 = vector.extract_strided_slice %204 {offsets = [0, 0], sizes = [16, 32], strides = [1, 1]} : vector<16x128xf32> to vector<16x32xf32>
    %207 = vector.extract_strided_slice %204 {offsets = [0, 32], sizes = [16, 32], strides = [1, 1]} : vector<16x128xf32> to vector<16x32xf32>
    %208 = vector.extract_strided_slice %205 {offsets = [0, 64], sizes = [16, 32], strides = [1, 1]} : vector<16x128xf32> to vector<16x32xf32>
    %209 = vector.extract_strided_slice %204 {offsets = [0, 96], sizes = [16, 32], strides = [1, 1]} : vector<16x128xf32> to vector<16x32xf32>
    %210 = arith.mulf %207, %189 : vector<16x32xf32>
    %211 = arith.mulf %206, %208 : vector<16x32xf32>
    %212 = arith.addf %210, %211 : vector<16x32xf32>
    %213 = math.tanh %212 : vector<16x32xf32>
    %214 = arith.mulf %209, %213 : vector<16x32xf32>
    %215 = arith.truncf %214 : vector<16x32xf32> to vector<16x32xbf16>
    %cst_24 = arith.constant dense<0.000000e+00> : vector<16x256xf32>
    %216 = tpu.matmul %215, %0, %cst_24 {dimension_numbers = #tpu.dot_dimension_numbers<[1], [0], [0], [1], [0, 0, 1, 1], [], []>} : vector<16x32xbf16>, vector<32x256xbf16>, vector<16x256xf32> -> vector<16x256xf32>
    %217 = vector.extract_strided_slice %216 {offsets = [0, 0], sizes = [16, 128], strides = [1, 1]} : vector<16x256xf32> to vector<16x128xf32>
    %218 = vector.extract_strided_slice %216 {offsets = [0, 128], sizes = [16, 128], strides = [1, 1]} : vector<16x256xf32> to vector<16x128xf32>
    %219 = vector.shape_cast %51 : vector<16x1xi1> to vector<16x1xi1>
    %220 = vector.broadcast %219 : vector<16x1xi1> to vector<16x128xi1>
    %221 = arith.select %220, %217, %218 : vector<16x128xi1>, vector<16x128xf32>
    %222 = arith.addf %221, %48 : vector<16x128xf32>
    %223 = arith.negf %222 : vector<16x128xf32>
    %224 = math.exp %223 : vector<16x128xf32>
    %cst_25 = arith.constant 1.000000e+00 : f32
    %225 = vector.broadcast %cst_25 : f32 to vector<16x128xf32>
    %226 = arith.addf %225, %224 : vector<16x128xf32>
    %227 = arith.divf %225, %226 : vector<16x128xf32>
    %228 = math.tanh %222 : vector<16x128xf32>
    %229 = vector.extract_strided_slice %227 {offsets = [0, 0], sizes = [16, 32], strides = [1, 1]} : vector<16x128xf32> to vector<16x32xf32>
    %230 = vector.extract_strided_slice %227 {offsets = [0, 32], sizes = [16, 32], strides = [1, 1]} : vector<16x128xf32> to vector<16x32xf32>
    %231 = vector.extract_strided_slice %228 {offsets = [0, 64], sizes = [16, 32], strides = [1, 1]} : vector<16x128xf32> to vector<16x32xf32>
    %232 = vector.extract_strided_slice %227 {offsets = [0, 96], sizes = [16, 32], strides = [1, 1]} : vector<16x128xf32> to vector<16x32xf32>
    %233 = arith.mulf %230, %212 : vector<16x32xf32>
    %234 = arith.mulf %229, %231 : vector<16x32xf32>
    %235 = arith.addf %233, %234 : vector<16x32xf32>
    %236 = math.tanh %235 : vector<16x32xf32>
    %237 = arith.mulf %232, %236 : vector<16x32xf32>
    %238 = vector.extract_strided_slice %237 {offsets = [0, 0], sizes = [8, 32], strides = [1, 1]} : vector<16x32xf32> to vector<8x32xf32>
    %239 = vector.extract_strided_slice %237 {offsets = [8, 0], sizes = [8, 32], strides = [1, 1]} : vector<16x32xf32> to vector<8x32xf32>
    %c0_26 = arith.constant 0 : index
    %c0_27 = arith.constant 0 : index
    %240 = vector.load %arg5[%c0_26, %c0_27] : memref<64x4xf32, #tpu.memory_space<vmem>>, vector<64x4xf32>
    %241 = vector.extract_strided_slice %240 {offsets = [0, 0], sizes = [32, 4], strides = [1, 1]} : vector<64x4xf32> to vector<32x4xf32>
    %cst_28 = arith.constant dense<0.000000e+00> : vector<8x4xf32>
    %242 = tpu.matmul %238, %241, %cst_28 {dimension_numbers = #tpu.dot_dimension_numbers<[1], [0], [0], [1], [0, 0, 1, 1], [], []>} : vector<8x32xf32>, vector<32x4xf32>, vector<8x4xf32> -> vector<8x4xf32>
    %243 = vector.extract_strided_slice %240 {offsets = [32, 0], sizes = [32, 4], strides = [1, 1]} : vector<64x4xf32> to vector<32x4xf32>
    %cst_29 = arith.constant dense<0.000000e+00> : vector<8x4xf32>
    %244 = tpu.matmul %239, %243, %cst_29 {dimension_numbers = #tpu.dot_dimension_numbers<[1], [0], [0], [1], [0, 0, 1, 1], [], []>} : vector<8x32xf32>, vector<32x4xf32>, vector<8x4xf32> -> vector<8x4xf32>
    %245 = arith.addf %242, %244 : vector<8x4xf32>
    %c0_30 = arith.constant 0 : index
    %c0_31 = arith.constant 0 : index
    %246 = vector.load %arg6[%c0_30, %c0_31] : memref<1x4xf32, #tpu.memory_space<vmem>>, vector<1x4xf32>
    %247 = vector.broadcast %246 : vector<1x4xf32> to vector<8x4xf32>
    %248 = arith.addf %245, %247 : vector<8x4xf32>
    %cst_32 = arith.constant dense<0xFF800000> : vector<8xf32>
    %249 = vector.multi_reduction <maximumf>, %248, %cst_32 [1] : vector<8x4xf32> to vector<8xf32>
    %250 = vector.shape_cast %249 : vector<8xf32> to vector<8x1xf32>
    %251 = vector.broadcast %250 : vector<8x1xf32> to vector<8x4xf32>
    %252 = arith.subf %248, %251 : vector<8x4xf32>
    %253 = math.exp %252 : vector<8x4xf32>
    %cst_33 = arith.constant dense<0.000000e+00> : vector<8xf32>
    %254 = vector.multi_reduction <add>, %253, %cst_33 [1] : vector<8x4xf32> to vector<8xf32>
    %255 = vector.shape_cast %254 : vector<8xf32> to vector<8x1xf32>
    %256 = vector.broadcast %255 : vector<8x1xf32> to vector<8x4xf32>
    %257 = arith.divf %253, %256 : vector<8x4xf32>
    %c0_34 = arith.constant 0 : index
    %c0_35 = arith.constant 0 : index
    %258 = vector.load %arg7[%c0_34, %c0_35] : memref<8x4xf32, #tpu.memory_space<vmem>>, vector<8x4xf32>
    tpu.vector_store %arg7[%c0_34, %c0_35], %257 {strides = array<i32>} : memref<8x4xf32, #tpu.memory_space<vmem>>, vector<8x4xf32>,
    return
  }
  func.func @transform_0(%arg0: i32) -> (i32, i32, i32) {
    %c0_i32 = arith.constant 0 : i32
    %c0_i32_0 = arith.constant 0 : i32
    %c0_i32_1 = arith.constant 0 : i32
    return %c0_i32, %arg0, %c0_i32_0 : i32, i32, i32
  }
  func.func @transform_1(%arg0: i32) -> (i32, i32) {
    %c0_i32 = arith.constant 0 : i32
    %c0_i32_0 = arith.constant 0 : i32
    %c0_i32_1 = arith.constant 0 : i32
    return %c0_i32, %c0_i32_0 : i32, i32
  }
  func.func @transform_2(%arg0: i32) -> (i32, i32) {
    %c0_i32 = arith.constant 0 : i32
    %c0_i32_0 = arith.constant 0 : i32
    %c0_i32_1 = arith.constant 0 : i32
    return %c0_i32, %c0_i32_0 : i32, i32
  }
  func.func @transform_3(%arg0: i32) -> (i32, i32) {
    %c0_i32 = arith.constant 0 : i32
    %c0_i32_0 = arith.constant 0 : i32
    %c0_i32_1 = arith.constant 0 : i32
    return %c0_i32, %c0_i32_0 : i32, i32
  }
  func.func @transform_4(%arg0: i32) -> (i32, i32) {
    %c0_i32 = arith.constant 0 : i32
    %c0_i32_0 = arith.constant 0 : i32
    %c0_i32_1 = arith.constant 0 : i32
    return %c0_i32, %c0_i32_0 : i32, i32
  }
  func.func @transform_5(%arg0: i32) -> (i32, i32) {
    %c0_i32 = arith.constant 0 : i32
    %c0_i32_0 = arith.constant 0 : i32
    %c0_i32_1 = arith.constant 0 : i32
    return %c0_i32, %c0_i32_0 : i32, i32
  }
  func.func @transform_6(%arg0: i32) -> (i32, i32) {
    %c0_i32 = arith.constant 0 : i32
    %c0_i32_0 = arith.constant 0 : i32
    return %arg0, %c0_i32 : i32, i32
  }
}

</mosaic_0001>

<bundles_post_ra>
// kernel: tpu_custom_call.1
= control target key start
LH: loop header
LB: loop body
LE: loop exit
PB: predicated region body
PF: predicated region fallthrough
CT: control target
= control target key end

     0   :  { %11 = vsyncpa [#allocation3], 0  ;;  %s2223_s0 = inlined_call_operand.hbm [shape: f32[8,16,32], index: 0, kind: input, shape index: {}]   ;;  %s2224_s1 = inlined_call_operand.vmem [shape: bf16[32,256], index: 1, kind: input, shape index: {}]   ;;  %s2225_s2 = inlined_call_operand.vmem [shape: f32[1,256], index: 2, kind: input, shape index: {}]   ;;  %s2226_s3 = inlined_call_operand.vmem [shape: bf16[32,256], index: 3, kind: input, shape index: {}]   ;;  %s2227_s4 = inlined_call_operand.vmem [shape: f32[64,4], index: 4, kind: input, shape index: {}]   ;;  %s2228_s5 = inlined_call_operand.vmem [shape: f32[1,4], index: 5, kind: input, shape index: {}]   ;;  %s2229_s6 = inlined_call_operand.vmem [shape: f32[16,4], index: 6, kind: output, shape index: {}]  }
   0x1   :  { %13 = vsyncpa [#allocation3 + $0x1], 0  ;;  %s1888_s21 = smov 0   ;;  %s1890_s22 = smov 0  }
   0x2   :  { %s1892_s23 = smov 0   ;;  %s1894_s24 = smov 0  }
   0x3 LB: > { %s1907_s25 = sadd.s32 4294967295, %s1841_s24   ;;  %s1910_s26 = sadd.s32 1, %s1841_s24   ;;  %s1841_s24 = sphi %s1894_s24, %s2235_s24   ;;  %s1837_s23 = sphi %s1892_s23, %s2234_s23   ;;  %s1833_s22 = sphi %s1890_s22, %s2233_s22   ;;  %s1829_s21 = sphi %s1888_s21, %s2232_s21  }
   0x4   : > { %s23_s27 = ssub.s32 %s1841_s24, %s1910_s26  ;;  %s26_s28 = sadd.s32 1, %s1837_s23 }
   0x5   : > { %p24_p0 = scmp.eq.s32.totalorder %s23_s27, 0  ;;  %p33_p1 = scmp.ne.s32.totalorder %s1837_s23, %s1833_s22 }
   0x6   : > { %p34_p2 = scmp.eq.s32.totalorder %s1841_s24, 0  ;;  %p39_p3 = scmp.ne.s32.totalorder %s1833_s22, %s1829_s21 }
   0x7   : > { %s1920_s29 = scalar_select %p24_p0, %s1837_s23, %s26_s28  }
   0x8   : > { %p35_p4 = por %p34_p2, %p33_p1  ;;  %p40_p5 = scmp.eq.s32.totalorder %s1907_s25, 0 }
   0x9   : > { %p1591_p6 = scmp.lt.s32.totalorder %s1841_s24, 2  ;;  %s209_s7 = sand.u32 1, %s1837_s23  }
   0xa   : > { %p1924_p7 = por %p40_p5, %p39_p3  ;;  %s1496_s8 = sshll.u32 %s209_s7, 6 }
   0xb   : > { %s1497_s9 = sshll.u32 %s1841_s24, 7  ;;  %s213_s13 = scalar_lea.vmem [#allocation2], %s1496_s8 }
   0xc   : > { %s1933_s12 = scalar_lea.hbm %s2223_s0, %s1497_s9  ;;  %s219_s14 = sshll.u32 %s213_s13, 4  ;;  %s1935_s14 = int_to_ptr.vmem [resolvable:$true] %s219_s14 }
   0xd   : > { %p1937_p8 = pnand %p1591_p6, %p35_p4  ;;  %s1941_s16 = scalar_lea.sflag [#allocation3], %s209_s7 }
   0xe   : > { %s1777_s17 = scalar_lea.hbm %s1933_s12, 1024  ;;  %s1782_s20 = scalar_lea.hbm %s2223_s0, 2048 }
   0xf   : > { %p1778_p9 = scmp.ne.s32.totalorder %s1933_s12, %s1777_s17  ;;  %p1779_p10 = pneg %p1937_p8 }
  0x10   : > { %p1783_p13 = scmp.lt.u32.totalorder %s1933_s12, %s2223_s0  ;;  %p1784_p0 = scmp.lt.u32.totalorder %s1782_s20, %s1777_s17 }
  0x11   : > { %p1780_p11 = pnand %p1779_p10, %p1778_p9  ;;  %p1786_p2 = scmp.lt.u32.totalorder %s1777_s17, %s1933_s12 }
  0x12   : > { %p1785_p1 = por %p1784_p0, %p1783_p13 }
  0x13   : > { %p1781_p12 = pneg %p1780_p11 }
  0x14   : > { %p1787_p3 = por %p1786_p2, %p1785_p1 }
  0x16   : > { %p1788_p4 = pnand %p1787_p3, %p1781_p12 }
  0x18   : > { %1791 = shalt.err (!%p1788_p4)
}
  0x19   : > { %s1792_s28 = scalar_lea.vmem %s1935_s14, 1024  ;;  %s1843_s7 = smov [#allocation2]  }
  0x1a   : > { %p1793_p5 = scmp.ne.s32.totalorder %s1935_s14, %s1792_s28  ;;  %s1797_s8 = sshll.u32 %s1843_s7, 4  ;;  %s1798_s8 = int_to_ptr.vmem [resolvable:$false] %s1797_s8 }
  0x1b   : > { %s1799_s9 = scalar_lea.vmem %s1798_s8, 2048  ;;  %p1800_p11 = scmp.lt.s32.totalorder %s1935_s14, %s1798_s8 }
  0x1c   : > { %p1795_p6 = pnand %p1793_p5, %p1779_p10  ;;  %p1801_p13 = scmp.lt.s32.totalorder %s1799_s9, %s1792_s28 }
  0x1e   : > { %p1796_p9 = pneg %p1795_p6  ;;  %p1802_p0 = por %p1801_p13, %p1800_p11 }
  0x20   : > { %p1803_p1 = pnand %p1802_p0, %p1796_p9 }
  0x22   : > { %1806 = shalt.err (!%p1803_p1)
}
  0x23   : > { %s1844_s10 = smov 256   ;;  %s1845_s11 = smov 128  }
  0x24   : > { %s1846_s13 = smov 8   ;;  %p1498_p10 = scmp.ge.s32.totalorder %s1841_s24, 1 }
  0x25   : > { %1590 = dma.hbm_to_vmem [thread:$0]  (!%p1937_p8), %s1933_s12, 1024, %s1935_s14, %s1941_s16, %s1844_s10, %s1845_s11, %s1846_s13  }
  0x26   : > { %p227_p12 = scmp.lt.s32.totalorder %s1841_s24, 3 }
  0x28   : > { %p228_p2 = pnand %p1498_p10, %p227_p12 }
  0x29   : > { %s233_s17 = sand.u32 (!%p228_p2), 1, %s1833_s22  }
  0x2a   : > { %231 = sbr.rel (%p228_p2) target bundleno = 6271 (0x187f), region = 44  ;;  %s1499_s18 = sshll.u32 (!%p228_p2), %s233_s17, 6 }
  0x2b   : > { %s234_s19 = scalar_lea.sflag (!%p228_p2), [#allocation3], %s233_s17  ;;  %s1972_s20 = scalar_lea.vmem (!%p228_p2), [#allocation2], %s1499_s18 }
  0x31   : > { %1824 = dma.done.wait (%p1924_p7), %s234_s19, 1024  }
  0x32   : > { %1826 = vsyncadd (%p1924_p7), %s234_s19, 4294966272  ;;  %v1847_v0 = vmov 0   ;;  %v1633_v1 = vld [vmem:[%s2224_s1 + $0x4] ss:$8 sps:$4 sm:$0xff]   ;;  %v1635_v2 = vld [vmem:[%s2224_s1] ss:$8 sps:$4 sm:$0xff]   ;;  %v292_v21 = vlaneseq }
  0x33   : > { %367 = vmatprep.mubr.bf16.mxu0 %v1847_v0  ;;  %468 = vmatprep.mubr.bf16.mxu1 %v1847_v0  ;;  %v1989_v3 = vld [vmem:[%s2226_s3 + $0x4] ss:$8 sps:$4 sm:$0xff]   ;;  %v1994_v4 = vld [vmem:[%s2226_s3] ss:$8 sps:$4 sm:$0xff]   ;;  %v1639_v5 = vld [vmem:[%s2224_s1 + $0x14] ss:$8 sps:$4 sm:$0xff]  }
  0x34   : > { %335 = vmatprep.subr.bf16.mxu0 %v1633_v1  ;;  %v1641_v6 = vld [vmem:[%s2224_s1 + $0x10] ss:$8 sps:$4 sm:$0xff]   ;;  %436 = vmatprep.subr.bf16.mxu1 %v1989_v3  ;;  %v2006_v7 = vld [vmem:[%s2226_s3 + $0x14] ss:$8 sps:$4 sm:$0xff]   ;;  %v274_v9 = vld [vmem:[%s1972_s20] sm:$0xff]  ;;  %vm322_vm0 = vcmask 261120  }
  0x35   : > { %336 = vmatpush1.bf16.msra.mxu0 %v1635_v2  ;;  %437 = vmatpush1.bf16.msra.mxu1 %v1994_v4  ;;  %v2012_v8 = vld [vmem:[%s2226_s3 + $0x10] ss:$8 sps:$4 sm:$0xff]   ;;  %v275_v10 = vld [vmem:[%s1972_s20 + $0x8] sm:$0xff]  ;;  %v278_v15 = vld [vmem:[%s1972_s20 + $0x20] sm:$0xff]  ;;  %v293_v22 = vshrl.u32 %v292_v21, 7  ;;  %s1849_s24 = smov 32  }
  0x36   : > { %337 = vmatprep.subr.bf16.mxu0 %v1639_v5  ;;  %438 = vmatprep.subr.bf16.mxu1 %v2006_v7  ;;  %v282_v11 = vpack.c.bf16 %v275_v10, %v274_v9  ;;  %v276_v12 = vld [vmem:[%s1972_s20 + $0x10] sm:$0xff]  ;;  %v277_v13 = vld [vmem:[%s1972_s20 + $0x18] sm:$0xff]  ;;  %v279_v16 = vld [vmem:[%s1972_s20 + $0x28] sm:$0xff]  ;;  %vm1851_vm1 = vmmov 0   ;;  %vm1415_vm2 = vcmask 31744   ;;  %p265_p7 = scmp.lt.s32.totalorder %s1907_s25, 1 }
  0x37   : > { %v283_v14 = vpack.c.bf16 %v277_v13, %v276_v12  ;;  %v284_v17 = vpack.c.bf16 %v279_v16, %v278_v15  ;;  %v280_v18 = vld [vmem:[%s1972_s20 + $0x30] sm:$0xff]  ;;  %v281_v19 = vld [vmem:[%s1972_s20 + $0x38] sm:$0xff]  ;;  %v294_v23 = vsub.s32 0, %v293_v22  ;;  %v290_v24 = vld [vmem:[%s2225_s2] sm:$0x3]  ;;  %v298_v25 = vsub.s32 1, %v293_v22 }
  0x38   : > { %v285_v20 = vpack.c.bf16 %v281_v19, %v280_v18  ;;  %s1848_s20 = smov 64   ;;  %s2237_s25 = smov (!%p265_p7, %s1907_s25), 1 }
  0x39   : > { %338 = vmatpush1.bf16.msra.mxu0 %v1641_v6  ;;  %439 = vmatpush1.bf16.msra.mxu1 %v2012_v8  ;;  %v295_v26 = vrot.slane %v290_v24, %v294_v23  ;;  %v299_v27 = vrot.slane %v290_v24, %v298_v25 }
  0x3a   : > { %848 = vmatprep.subr.bf16.mxu0 %v1989_v3  ;;  %542 = vmatprep.subr.bf16.mxu1 %v1989_v3 }
  0x3c   : > { %1505 = vmatmul.mubr.msk.bf16.vlgmr.msra.gmra.mrb[0].mxu0 %vm322_vm0, %v282_v11  ;;  %469 = vmatmul.mubr.bf16.vlgmr.msra.gmra.mrb[0].mxu1 %v1847_v0 }
  0x3d   : > { %377 = vmatprep.mubr.bf16.mxu0 %v1847_v0  ;;  %849 = vmatpush1.bf16.msra.mxu0 %v1994_v4 }
  0x3e   : > { %850 = vmatprep.subr.bf16.mxu0 %v2006_v7  ;;  %543 = vmatpush1.bf16.msra.mxu1 %v1994_v4 }
  0x3f   : > { %574 = vmatprep.mubr.bf16.mxu1 %v1847_v0  ;;  %544 = vmatprep.subr.bf16.mxu1 %v2006_v7 }
  0x41   : > { %851 = vmatpush1.bf16.msra.mxu0 %v2012_v8 }
  0x42   : > { %1052 = vmatprep.subr.bf16.mxu0 %v1989_v3  ;;  %545 = vmatpush1.bf16.msra.mxu1 %v2012_v8 }
  0x43   : > { %644 = vmatprep.subr.bf16.mxu1 %v1989_v3 }
  0x44   : > { %1506 = vmatmul.mubr.msk.bf16.gmra.mrb[4].mxu0 %vm322_vm0, %v283_v14 }
  0x45   : > { %387 = vmatprep.mubr.bf16.mxu0 %v1847_v0 }
  0x4c   : > { %1507 = vmatmul.mubr.msk.bf16.gmra.mrb[8].mxu0 %vm322_vm0, %v284_v17 }
  0x4d   : > { %397 = vmatprep.mubr.bf16.mxu0 %v1847_v0 }
  0x54   : > { %1508 = vmatmul.mubr.msk.bf16.gmra.mrb[12].mxu0 %vm322_vm0, %v285_v20 }
  0x55   : > { %880 = vmatprep.mubr.bf16.mxu0 %v1847_v0 }
 0x10f   : > { %v369_v28 = vpop.f32.mrb[0].mxu0  ;;  %v470_v33 = vpop.f32.mrb[0].mxu1 }
 0x110   : > { %v370_v29 = vadd.f32 %v369_v28, %v295_v26  ;;  %v371_v30 = vpop.f32.mrb[1].mxu0  ;;  %v472_v37 = vpop.f32.mrb[1].mxu1 }
 0x111   : > { %v2047_v31 = vadd.f32 %v371_v30, %v299_v27  ;;  %v373_v32 = vpop.f32.mrb[2].mxu0  ;;  %v474_v39 = vpop.f32.mrb[2].mxu1 }
 0x112   : > { %v2049_v34 = vadd.f32 %v373_v32, %v295_v26  ;;  %v485_v35 = vadd.f32 %v470_v33, %v370_v29  ;;  %v375_v36 = vpop.f32.mrb[3].mxu0  ;;  %v476_v40 = vpop.f32.mrb[3].mxu1 }
 0x113   : > { %v2051_v38 = vadd.f32 %v375_v36, %v299_v27 }
 0x114   : > { %1645 = vtanh.f32 %v485_v35  ;;  %v1513_v9 = vmul.f32 -1.442695, %v485_v35 }
 0x117   : > { %v379_v41 = vpop.f32.mrb[4].mxu0 }
 0x118   : > { %v2053_v42 = vadd.f32 %v379_v41, %v295_v26  ;;  %v381_v43 = vpop.f32.mrb[5].mxu0 }
 0x119   : > { %v2055_v44 = vadd.f32 %v381_v43, %v299_v27  ;;  %v383_v45 = vpop.f32.mrb[6].mxu0 }
 0x11a   : > { %v2057_v46 = vadd.f32 %v383_v45, %v295_v26  ;;  %v385_v47 = vpop.f32.mrb[7].mxu0 }
 0x11b   : > { %v2059_v48 = vadd.f32 %v385_v47, %v299_v27 }
 0x11e   : > { %v1646_v49 = vpop.eup %1645 }
 0x11f   : > { %v389_v50 = vpop.f32.mrb[8].mxu0  ;;  %505 = vrot.lane.b32.xlu0 %v1646_v49, %s1848_s20 }
 0x120   : > { %v2062_v51 = vadd.f32 %v389_v50, %v295_v26  ;;  %v391_v52 = vpop.f32.mrb[9].mxu0 }
 0x121   : > { %v2064_v53 = vadd.f32 %v391_v52, %v299_v27  ;;  %v393_v54 = vpop.f32.mrb[10].mxu0 }
 0x122   : > { %v2066_v55 = vadd.f32 %v393_v54, %v295_v26  ;;  %v395_v56 = vpop.f32.mrb[11].mxu0 }
 0x123   : > { %v2068_v57 = vadd.f32 %v395_v56, %v299_v27 }
 0x127   : > { %v399_v58 = vpop.f32.mrb[12].mxu0 }
 0x128   : > { %v2070_v59 = vadd.f32 %v399_v58, %v295_v26  ;;  %v401_v60 = vpop.f32.mrb[13].mxu0 }
 0x129   : > { %v402_v61 = vadd.f32 %v401_v60, %v299_v27  ;;  %v403_v62 = vpop.f32.mrb[14].mxu0 }
 0x12a   : > { %v2072_v63 = vadd.f32 %v403_v62, %v295_v26  ;;  %v405_v1 = vpop.f32.mrb[15].mxu0 }
 0x12b   : > { %v406_v2 = vadd.f32 %v405_v1, %v299_v27 }
 0x12d   : > { %v486_v5 = vadd.f32 %v476_v40, %v406_v2 }
 0x12f   : > { %1647 = vtanh.f32 %v486_v5  ;;  %v1514_v12 = vmul.f32 -1.442695, %v486_v5 }
 0x130   : > { %1649 = vpow2.f32 %v1513_v9 }
 0x139   : > { %v1648_v6 = vpop.eup %1647 }
 0x13a   : > { %507 = vrot.lane.b32.xlu0 %v1648_v6, %s1848_s20  ;;  %v1650_v10 = vpop.eup %1649 }
 0x13b   : > { %v493_v11 = vadd.f32 1.0, %v1650_v10 }
 0x13d   : > { %1651 = vrcp.f32 %v493_v11 }
 0x13e   : > { %1653 = vpow2.f32 %v1514_v12 }
 0x147   : > { %v1652_v13 = vpop.eup %1651 }
 0x148   : > { %v1654_v16 = vpop.eup %1653  ;;  %v501_v21 = vmul.f32 0.0, %v1652_v13 }
 0x149   : > { %v494_v17 = vadd.f32 1.0, %v1654_v16 }
 0x14b   : > { %1655 = vrcp.f32 %v494_v17 }
 0x155   : > { %v1656_v18 = vpop.eup %1655 }
 0x156   : > { %v502_v25 = vmul.f32 0.0, %v1656_v18 }
 0x191   : > { %v506_v14 = vpop.permute.xlu0 %505 }
 0x192   : > { %v511_v15 = vmul.f32 %v1652_v13, %v506_v14 }
 0x194   : > { %515 = vrot.lane.b32.xlu1 %v511_v15, %s1849_s24 }
 0x1ac   : > { %v508_v19 = vpop.permute.xlu0 %507 }
 0x1ad   : > { %v512_v20 = vmul.f32 %v1656_v18, %v508_v19 }
 0x1af   : > { %517 = vrot.lane.b32.xlu1 %v512_v20, %s1849_s24 }
 0x206   : > { %v516_v22 = vpop.permute.xlu1 %515 }
 0x207   : > { %v521_v23 = vadd.f32 %v516_v22, %v501_v21 }
 0x209   : > { %1657 = vtanh.f32 %v521_v23 }
 0x213   : > { %v1658_v24 = vpop.eup %1657 }
 0x214   : > { %527 = vrot.lane.b32.xlu0 %v1658_v24, %s1848_s20 }
 0x221   : > { %v518_v26 = vpop.permute.xlu1 %517 }
 0x222   : > { %v522_v27 = vadd.f32 %v518_v26, %v502_v25 }
 0x224   : > { %1659 = vtanh.f32 %v522_v27 }
 0x22e   : > { %v1660_v28 = vpop.eup %1659 }
 0x22f   : > { %529 = vrot.lane.b32.xlu1 %v1660_v28, %s1848_s20 }
 0x286   : > { %v528_v29 = vpop.permute.xlu0 %527 }
 0x287   : > { %v533_v32 = vmul.f32 %v1652_v13, %v528_v29 }
 0x2a1   : > { %v530_v30 = vpop.permute.xlu1 %529 }
 0x2a2   : > { %v534_v33 = vmul.f32 %v1656_v18, %v530_v30 }
 0x2a4   : > { %v535_v35 = vpack.c.bf16 %v534_v33, %v533_v32 }
 0x2a6   : > { %537 = vrot.lane.b32.xlu0 %v535_v35, %s1849_s24 }
 0x318   : > { %v538_v36 = vpop.permute.xlu0 %537 }
 0x319   : > { %1515 = vmatmul.mubr.msk.bf16.vlgmr.msra.gmra.mrb[4].mxu1 %vm322_vm0, %v538_v36 }
 0x31a   : > { %645 = vmatpush1.bf16.msra.mxu1 %v1994_v4  ;;  %676 = vmatprep.mubr.bf16.mxu1 %v1847_v0 }
 0x31b   : > { %646 = vmatprep.subr.bf16.mxu1 %v2006_v7 }
 0x31e   : > { %647 = vmatpush1.bf16.msra.mxu1 %v2012_v8 }
 0x31f   : > { %746 = vmatprep.subr.bf16.mxu1 %v1989_v3 }
 0x3ec   : > { %v576_v37 = vpop.f32.mrb[4].mxu1 }
 0x3ed   : > { %v587_v39 = vadd.f32 %v576_v37, %v2049_v34  ;;  %v578_v40 = vpop.f32.mrb[5].mxu1 }
 0x3ee   : > { %v580_v41 = vpop.f32.mrb[6].mxu1 }
 0x3ef   : > { %1661 = vtanh.f32 %v587_v39  ;;  %v582_v43 = vpop.f32.mrb[7].mxu1  ;;  %v1516_v50 = vmul.f32 -1.442695, %v587_v39 }
 0x3f0   : > { %v588_v45 = vadd.f32 %v582_v43, %v402_v61 }
 0x3f2   : > { %1663 = vtanh.f32 %v588_v45  ;;  %v1517_v52 = vmul.f32 -1.442695, %v588_v45 }
 0x3f3   : > { %1665 = vpow2.f32 %v1516_v50 }
 0x3f4   : > { %1667 = vpow2.f32 %v1517_v52 }
 0x3f9   : > { %v1662_v47 = vpop.eup %1661 }
 0x3fa   : > { %607 = vrot.lane.b32.xlu1 %v1662_v47, %s1848_s20 }
 0x3fc   : > { %v1664_v49 = vpop.eup %1663 }
 0x3fd   : > { %609 = vrot.lane.b32.xlu0 %v1664_v49, %s1848_s20  ;;  %v1666_v54 = vpop.eup %1665 }
 0x3fe   : > { %v1668_v56 = vpop.eup %1667  ;;  %v595_v58 = vadd.f32 1.0, %v1666_v54 }
 0x3ff   : > { %v596_v34 = vadd.f32 1.0, %v1668_v56 }
 0x400   : > { %1669 = vrcp.f32 %v595_v58 }
 0x401   : > { %1671 = vrcp.f32 %v596_v34 }
 0x40a   : > { %v1670_v60 = vpop.eup %1669 }
 0x40b   : > { %v1672_v1 = vpop.eup %1671  ;;  %v603_v6 = vmul.f32 %v1670_v60, %v521_v23 }
 0x40c   : > { %v604_v11 = vmul.f32 %v1672_v1, %v522_v27 }
 0x46c   : > { %v608_v62 = vpop.permute.xlu1 %607 }
 0x46d   : > { %v613_v61 = vmul.f32 %v1670_v60, %v608_v62 }
 0x46f   : > { %617 = vrot.lane.b32.xlu1 %v613_v61, %s1849_s24  ;;  %v610_v2 = vpop.permute.xlu0 %609 }
 0x470   : > { %v614_v5 = vmul.f32 %v1672_v1, %v610_v2 }
 0x472   : > { %619 = vrot.lane.b32.xlu0 %v614_v5, %s1849_s24 }
 0x4e1   : > { %v618_v9 = vpop.permute.xlu1 %617 }
 0x4e2   : > { %v623_v10 = vadd.f32 %v618_v9, %v603_v6 }
 0x4e4   : > { %1673 = vtanh.f32 %v623_v10  ;;  %v620_v12 = vpop.permute.xlu0 %619 }
 0x4e5   : > { %v624_v13 = vadd.f32 %v620_v12, %v604_v11 }
 0x4e7   : > { %1675 = vtanh.f32 %v624_v13 }
 0x4ee   : > { %v1674_v14 = vpop.eup %1673 }
 0x4ef   : > { %629 = vrot.lane.b32.xlu1 %v1674_v14, %s1848_s20 }
 0x4f1   : > { %v1676_v15 = vpop.eup %1675 }
 0x4f2   : > { %631 = vrot.lane.b32.xlu0 %v1676_v15, %s1848_s20 }
 0x561   : > { %v630_v16 = vpop.permute.xlu1 %629 }
 0x562   : > { %v635_v18 = vmul.f32 %v1670_v60, %v630_v16 }
 0x564   : > { %v632_v17 = vpop.permute.xlu0 %631 }
 0x565   : > { %v636_v19 = vmul.f32 %v1672_v1, %v632_v17 }
 0x567   : > { %v637_v20 = vpack.c.bf16 %v636_v19, %v635_v18 }
 0x569   : > { %639 = vrot.lane.b32.xlu1 %v637_v20, %s1849_s24 }
 0x5db   : > { %v640_v21 = vpop.permute.xlu1 %639 }
 0x5dc   : > { %1518 = vmatmul.mubr.msk.bf16.vlgmr.msra.gmra.mrb[8].mxu1 %vm322_vm0, %v640_v21 }
 0x5dd   : > { %747 = vmatpush1.bf16.msra.mxu1 %v1994_v4  ;;  %778 = vmatprep.mubr.bf16.mxu1 %v1847_v0 }
 0x5de   : > { %748 = vmatprep.subr.bf16.mxu1 %v2006_v7 }
 0x5e1   : > { %749 = vmatpush1.bf16.msra.mxu1 %v2012_v8 }
 0x5e2   : > { %950 = vmatprep.subr.bf16.mxu1 %v1989_v3 }
 0x6af   : > { %v678_v22 = vpop.f32.mrb[8].mxu1 }
 0x6b0   : > { %v689_v23 = vadd.f32 %v678_v22, %v2053_v42  ;;  %v680_v24 = vpop.f32.mrb[9].mxu1 }
 0x6b1   : > { %v682_v25 = vpop.f32.mrb[10].mxu1 }
 0x6b2   : > { %1677 = vtanh.f32 %v689_v23  ;;  %v684_v26 = vpop.f32.mrb[11].mxu1  ;;  %v1519_v30 = vmul.f32 -1.442695, %v689_v23 }
 0x6b3   : > { %v690_v27 = vadd.f32 %v684_v26, %v2068_v57 }
 0x6b5   : > { %1679 = vtanh.f32 %v690_v27  ;;  %v1520_v32 = vmul.f32 -1.442695, %v690_v27 }
 0x6b6   : > { %1681 = vpow2.f32 %v1519_v30 }
 0x6b7   : > { %1683 = vpow2.f32 %v1520_v32 }
 0x6bc   : > { %v1678_v28 = vpop.eup %1677 }
 0x6bd   : > { %709 = vrot.lane.b32.xlu0 %v1678_v28, %s1848_s20 }
 0x6bf   : > { %v1680_v29 = vpop.eup %1679 }
 0x6c0   : > { %711 = vrot.lane.b32.xlu1 %v1680_v29, %s1848_s20  ;;  %v1682_v33 = vpop.eup %1681 }
 0x6c1   : > { %v1684_v35 = vpop.eup %1683  ;;  %v697_v42 = vadd.f32 1.0, %v1682_v33 }
 0x6c2   : > { %v698_v36 = vadd.f32 1.0, %v1684_v35 }
 0x6c3   : > { %1685 = vrcp.f32 %v697_v42 }
 0x6c4   : > { %1687 = vrcp.f32 %v698_v36 }
 0x6cd   : > { %v1686_v37 = vpop.eup %1685 }
 0x6ce   : > { %v1688_v40 = vpop.eup %1687  ;;  %v705_v45 = vmul.f32 %v1686_v37, %v623_v10 }
 0x6cf   : > { %v706_v50 = vmul.f32 %v1688_v40, %v624_v13 }
 0x72f   : > { %v710_v39 = vpop.permute.xlu0 %709 }
 0x730   : > { %v715_v57 = vmul.f32 %v1686_v37, %v710_v39 }
 0x732   : > { %719 = vrot.lane.b32.xlu0 %v715_v57, %s1849_s24  ;;  %v712_v41 = vpop.permute.xlu1 %711 }
 0x733   : > { %v716_v43 = vmul.f32 %v1688_v40, %v712_v41 }
 0x735   : > { %721 = vrot.lane.b32.xlu1 %v716_v43, %s1849_s24 }
 0x7a4   : > { %v720_v47 = vpop.permute.xlu0 %719 }
 0x7a5   : > { %v725_v49 = vadd.f32 %v720_v47, %v705_v45 }
 0x7a7   : > { %1689 = vtanh.f32 %v725_v49  ;;  %v722_v52 = vpop.permute.xlu1 %721 }
 0x7a8   : > { %v726_v54 = vadd.f32 %v722_v52, %v706_v50 }
 0x7aa   : > { %1691 = vtanh.f32 %v726_v54 }
 0x7b1   : > { %v1690_v56 = vpop.eup %1689 }
 0x7b2   : > { %731 = vrot.lane.b32.xlu0 %v1690_v56, %s1848_s20 }
 0x7b4   : > { %v1692_v58 = vpop.eup %1691 }
 0x7b5   : > { %733 = vrot.lane.b32.xlu1 %v1692_v58, %s1848_s20 }
 0x824   : > { %v732_v34 = vpop.permute.xlu0 %731 }
 0x825   : > { %v737_v62 = vmul.f32 %v1686_v37, %v732_v34 }
 0x827   : > { %v734_v60 = vpop.permute.xlu1 %733 }
 0x828   : > { %v738_v61 = vmul.f32 %v1688_v40, %v734_v60 }
 0x82a   : > { %v739_v1 = vpack.c.bf16 %v738_v61, %v737_v62 }
 0x82c   : > { %741 = vrot.lane.b32.xlu0 %v739_v1, %s1849_s24 }
 0x89e   : > { %v742_v2 = vpop.permute.xlu0 %741 }
 0x89f   : > { %1521 = vmatmul.mubr.msk.bf16.vlgmr.msra.gmra.mrb[12].mxu1 %vm322_vm0, %v742_v2 }
 0x8a0   : > { %951 = vmatpush1.bf16.msra.mxu1 %v1994_v4  ;;  %982 = vmatprep.mubr.bf16.mxu1 %v1847_v0 }
 0x8a1   : > { %952 = vmatprep.subr.bf16.mxu1 %v2006_v7 }
 0x8a4   : > { %953 = vmatpush1.bf16.msra.mxu1 %v2012_v8 }
 0x8a5   : > { %1154 = vmatprep.subr.bf16.mxu1 %v1989_v3 }
 0x972   : > { %v780_v5 = vpop.f32.mrb[12].mxu1 }
 0x973   : > { %v791_v6 = vadd.f32 %v780_v5, %v2057_v46  ;;  %v782_v9 = vpop.f32.mrb[13].mxu1 }
 0x974   : > { %v784_v10 = vpop.f32.mrb[14].mxu1 }
 0x975   : > { %1693 = vtanh.f32 %v791_v6  ;;  %v786_v11 = vpop.f32.mrb[15].mxu1  ;;  %v1522_v15 = vmul.f32 -1.442695, %v791_v6 }
 0x976   : > { %v792_v12 = vadd.f32 %v786_v11, %v2064_v53 }
 0x978   : > { %1695 = vtanh.f32 %v792_v12  ;;  %v1523_v16 = vmul.f32 -1.442695, %v792_v12 }
 0x979   : > { %1697 = vpow2.f32 %v1522_v15 }
 0x97a   : > { %1699 = vpow2.f32 %v1523_v16 }
 0x97f   : > { %v1694_v13 = vpop.eup %1693 }
 0x980   : > { %811 = vrot.lane.b32.xlu1 %v1694_v13, %s1848_s20 }
 0x982   : > { %v1696_v14 = vpop.eup %1695 }
 0x983   : > { %813 = vrot.lane.b32.xlu0 %v1696_v14, %s1848_s20  ;;  %v1698_v3 = vpop.eup %1697 }
 0x984   : > { %v1700_v17 = vpop.eup %1699  ;;  %v799_v46 = vadd.f32 1.0, %v1698_v3 }
 0x985   : > { %v800_v18 = vadd.f32 1.0, %v1700_v17 }
 0x986   : > { %1701 = vrcp.f32 %v799_v46 }
 0x987   : > { %1703 = vrcp.f32 %v800_v18 }
 0x990   : > { %v1702_v19 = vpop.eup %1701 }
 0x991   : > { %v1704_v21 = vpop.eup %1703  ;;  %v807_v24 = vmul.f32 %v1702_v19, %v725_v49 }
 0x992   : > { %v808_v27 = vmul.f32 %v1704_v21, %v726_v54 }
 0x9f2   : > { %v812_v20 = vpop.permute.xlu1 %811 }
 0x9f3   : > { %v817_v53 = vmul.f32 %v1702_v19, %v812_v20 }
 0x9f5   : > { %821 = vrot.lane.b32.xlu1 %v817_v53, %s1849_s24  ;;  %v814_v22 = vpop.permute.xlu0 %813 }
 0x9f6   : > { %v818_v23 = vmul.f32 %v1704_v21, %v814_v22 }
 0x9f8   : > { %823 = vrot.lane.b32.xlu0 %v818_v23, %s1849_s24 }
 0xa67   : > { %v822_v25 = vpop.permute.xlu1 %821 }
 0xa68   : > { %v827_v26 = vadd.f32 %v822_v25, %v807_v24 }
 0xa6a   : > { %1705 = vtanh.f32 %v827_v26  ;;  %v824_v28 = vpop.permute.xlu0 %823 }
 0xa6b   : > { %v828_v29 = vadd.f32 %v824_v28, %v808_v27 }
 0xa6d   : > { %1707 = vtanh.f32 %v828_v29 }
 0xa74   : > { %v1706_v30 = vpop.eup %1705 }
 0xa75   : > { %833 = vrot.lane.b32.xlu1 %v1706_v30, %s1848_s20 }
 0xa77   : > { %v1708_v32 = vpop.eup %1707 }
 0xa78   : > { %835 = vrot.lane.b32.xlu0 %v1708_v32, %s1848_s20 }
 0xae7   : > { %v834_v33 = vpop.permute.xlu1 %833 }
 0xae8   : > { %v839_v42 = vmul.f32 %v1702_v19, %v834_v33 }
 0xaea   : > { %v836_v35 = vpop.permute.xlu0 %835 }
 0xaeb   : > { %v840_v36 = vmul.f32 %v1704_v21, %v836_v35 }
 0xaed   : > { %v841_v37 = vpack.c.bf16 %v840_v36, %v839_v42 }
 0xaef   : > { %843 = vrot.lane.b32.xlu1 %v841_v37, %s1849_s24 }
 0xb61   : > { %v844_v39 = vpop.permute.xlu1 %843 }
 0xb62   : > { %1524 = vmatmul.mubr.msk.bf16.vlgmr.msra.gmra.mrb[16].mxu0 %vm322_vm0, %v844_v39 }
 0xb63   : > { %1053 = vmatpush1.bf16.msra.mxu0 %v1994_v4  ;;  %1084 = vmatprep.mubr.bf16.mxu0 %v1847_v0 }
 0xb64   : > { %1054 = vmatprep.subr.bf16.mxu0 %v2006_v7 }
 0xb67   : > { %1055 = vmatpush1.bf16.msra.mxu0 %v2012_v8 }
 0xc35   : > { %v882_v57 = vpop.f32.mrb[16].mxu0 }
 0xc36   : > { %v893_v40 = vadd.f32 %v882_v57, %v2062_v51  ;;  %v884_v41 = vpop.f32.mrb[17].mxu0 }
 0xc37   : > { %v886_v43 = vpop.f32.mrb[18].mxu0 }
 0xc38   : > { %1709 = vtanh.f32 %v893_v40  ;;  %v888_v45 = vpop.f32.mrb[19].mxu0  ;;  %v1525_v52 = vmul.f32 -1.442695, %v893_v40 }
 0xc39   : > { %v894_v47 = vadd.f32 %v888_v45, %v2059_v48 }
 0xc3b   : > { %1711 = vtanh.f32 %v894_v47  ;;  %v1526_v54 = vmul.f32 -1.442695, %v894_v47 }
 0xc3c   : > { %1713 = vpow2.f32 %v1525_v52 }
 0xc3d   : > { %1715 = vpow2.f32 %v1526_v54 }
 0xc42   : > { %v1710_v49 = vpop.eup %1709 }
 0xc43   : > { %913 = vrot.lane.b32.xlu0 %v1710_v49, %s1848_s20 }
 0xc45   : > { %v1712_v50 = vpop.eup %1711 }
 0xc46   : > { %915 = vrot.lane.b32.xlu1 %v1712_v50, %s1848_s20  ;;  %v1714_v56 = vpop.eup %1713 }
 0xc47   : > { %v1716_v58 = vpop.eup %1715  ;;  %v901_v51 = vadd.f32 1.0, %v1714_v56 }
 0xc48   : > { %v902_v34 = vadd.f32 1.0, %v1716_v58 }
 0xc49   : > { %1717 = vrcp.f32 %v901_v51 }
 0xc4a   : > { %1719 = vrcp.f32 %v902_v34 }
 0xc53   : > { %v1718_v60 = vpop.eup %1717 }
 0xc54   : > { %v1720_v61 = vpop.eup %1719  ;;  %v909_v5 = vmul.f32 %v1718_v60, %v827_v26 }
 0xc55   : > { %v910_v10 = vmul.f32 %v1720_v61, %v828_v29 }
 0xcb5   : > { %v914_v62 = vpop.permute.xlu0 %913 }
 0xcb6   : > { %v919_v48 = vmul.f32 %v1718_v60, %v914_v62 }
 0xcb8   : > { %923 = vrot.lane.b32.xlu0 %v919_v48, %s1849_s24  ;;  %v916_v1 = vpop.permute.xlu1 %915 }
 0xcb9   : > { %v920_v2 = vmul.f32 %v1720_v61, %v916_v1 }
 0xcbb   : > { %925 = vrot.lane.b32.xlu1 %v920_v2, %s1849_s24 }
 0xd2a   : > { %v924_v6 = vpop.permute.xlu0 %923 }
 0xd2b   : > { %v929_v9 = vadd.f32 %v924_v6, %v909_v5 }
 0xd2d   : > { %1721 = vtanh.f32 %v929_v9  ;;  %v926_v11 = vpop.permute.xlu1 %925 }
 0xd2e   : > { %v930_v12 = vadd.f32 %v926_v11, %v910_v10 }
 0xd30   : > { %1723 = vtanh.f32 %v930_v12 }
 0xd37   : > { %v1722_v13 = vpop.eup %1721 }
 0xd38   : > { %935 = vrot.lane.b32.xlu0 %v1722_v13, %s1848_s20 }
 0xd3a   : > { %v1724_v14 = vpop.eup %1723 }
 0xd3b   : > { %937 = vrot.lane.b32.xlu1 %v1724_v14, %s1848_s20 }
 0xdaa   : > { %v936_v15 = vpop.permute.xlu0 %935 }
 0xdab   : > { %v941_v3 = vmul.f32 %v1718_v60, %v936_v15 }
 0xdad   : > { %v938_v16 = vpop.permute.xlu1 %937 }
 0xdae   : > { %v942_v17 = vmul.f32 %v1720_v61, %v938_v16 }
 0xdb0   : > { %v943_v46 = vpack.c.bf16 %v942_v17, %v941_v3 }
 0xdb2   : > { %945 = vrot.lane.b32.xlu0 %v943_v46, %s1849_s24 }
 0xe24   : > { %v946_v18 = vpop.permute.xlu0 %945 }
 0xe25   : > { %1527 = vmatmul.mubr.msk.bf16.vlgmr.msra.gmra.mrb[16].mxu1 %vm322_vm0, %v946_v18 }
 0xe26   : > { %1155 = vmatpush1.bf16.msra.mxu1 %v1994_v4  ;;  %1186 = vmatprep.mubr.bf16.mxu1 %v1847_v0 }
 0xe27   : > { %1156 = vmatprep.subr.bf16.mxu1 %v2006_v7 }
 0xe2a   : > { %1157 = vmatpush1.bf16.msra.mxu1 %v2012_v8 }
 0xef8   : > { %v984_v19 = vpop.f32.mrb[16].mxu1 }
 0xef9   : > { %v995_v20 = vadd.f32 %v984_v19, %v2066_v55  ;;  %v986_v53 = vpop.f32.mrb[17].mxu1 }
 0xefa   : > { %v988_v21 = vpop.f32.mrb[18].mxu1 }
 0xefb   : > { %1725 = vtanh.f32 %v995_v20  ;;  %v990_v22 = vpop.f32.mrb[19].mxu1  ;;  %v1528_v0 = vmul.f32 -1.442695, %v995_v20 }
 0xefc   : > { %v996_v23 = vadd.f32 %v990_v22, %v2055_v44 }
 0xefe   : > { %1727 = vtanh.f32 %v996_v23  ;;  %v1529_v7 = vmul.f32 -1.442695, %v996_v23 }
 0xeff   : > { %1729 = vpow2.f32 %v1528_v0 }
 0xf00   : > { %1731 = vpow2.f32 %v1529_v7 }
 0xf05   : > { %v1726_v24 = vpop.eup %1725 }
 0xf06   : > { %1015 = vrot.lane.b32.xlu1 %v1726_v24, %s1848_s20 }
 0xf08   : > { %v1728_v4 = vpop.eup %1727 }
 0xf09   : > { %1017 = vrot.lane.b32.xlu0 %v1728_v4, %s1848_s20  ;;  %v1730_v8 = vpop.eup %1729 }
 0xf0a   : > { %v1732_v25 = vpop.eup %1731  ;;  %v1003_v55 = vadd.f32 1.0, %v1730_v8 }
 0xf0b   : > { %v1004_v26 = vadd.f32 1.0, %v1732_v25 }
 0xf0c   : > { %1733 = vrcp.f32 %v1003_v55 }
 0xf0d   : > { %1735 = vrcp.f32 %v1004_v26 }
 0xf16   : > { %v1734_v27 = vpop.eup %1733 }
 0xf17   : > { %v1736_v29 = vpop.eup %1735  ;;  %v1011_v33 = vmul.f32 %v1734_v27, %v929_v9 }
 0xf18   : > { %v1012_v36 = vmul.f32 %v1736_v29, %v930_v12 }
 0xf78   : > { %v1016_v28 = vpop.permute.xlu1 %1015 }
 0xf79   : > { %v1021_v44 = vmul.f32 %v1734_v27, %v1016_v28 }
 0xf7b   : > { %1025 = vrot.lane.b32.xlu1 %v1021_v44, %s1849_s24  ;;  %v1018_v30 = vpop.permute.xlu0 %1017 }
 0xf7c   : > { %v1022_v32 = vmul.f32 %v1736_v29, %v1018_v30 }
 0xf7e   : > { %1027 = vrot.lane.b32.xlu0 %v1022_v32, %s1849_s24 }
 0xfed   : > { %v1026_v35 = vpop.permute.xlu1 %1025 }
 0xfee   : > { %v1031_v42 = vadd.f32 %v1026_v35, %v1011_v33 }
 0xff0   : > { %1737 = vtanh.f32 %v1031_v42  ;;  %v1028_v37 = vpop.permute.xlu0 %1027 }
 0xff1   : > { %v1032_v39 = vadd.f32 %v1028_v37, %v1012_v36 }
 0xff3   : > { %1739 = vtanh.f32 %v1032_v39 }
 0xffa   : > { %v1738_v57 = vpop.eup %1737 }
 0xffb   : > { %1037 = vrot.lane.b32.xlu1 %v1738_v57, %s1848_s20 }
 0xffd   : > { %v1740_v40 = vpop.eup %1739 }
 0xffe   : > { %1039 = vrot.lane.b32.xlu0 %v1740_v40, %s1848_s20 }
0x106d   : > { %v1038_v41 = vpop.permute.xlu1 %1037 }
0x106e   : > { %v1043_v45 = vmul.f32 %v1734_v27, %v1038_v41 }
0x1070   : > { %v1040_v43 = vpop.permute.xlu0 %1039 }
0x1071   : > { %v1044_v47 = vmul.f32 %v1736_v29, %v1040_v43 }
0x1073   : > { %v1045_v49 = vpack.c.bf16 %v1044_v47, %v1043_v45  ;;  %v1249_v45 = vld [vmem:[%s2227_s4] sm:$0xff]  ;;  %v1250_v47 = vld [vmem:[%s2227_s4 + $0x8] sm:$0xff] }
0x1075   : > { %1047 = vrot.lane.b32.xlu1 %v1045_v49, %s1849_s24  ;;  %v1253_v49 = vld [vmem:[%s2227_s4 + $0x20] sm:$0xff] }
0x10e7   : > { %v1048_v50 = vpop.permute.xlu1 %1047 }
0x10e8   : > { %1530 = vmatmul.mubr.msk.bf16.vlgmr.msra.gmra.mrb[20].mxu0 %vm322_vm0, %v1048_v50  ;;  %v1850_v50 = vmov 0.0|0.0  }
0x10e9   : > { %1579 = vmatprep.subr.bf16.mxu1 %v1850_v50  ;;  %1573 = vmatprep.subr.bf16.mxu0 %v1850_v50 }
0x11bb   : > { %v1086_v52 = vpop.f32.mrb[20].mxu0 }
0x11bc   : > { %v1097_v54 = vadd.f32 %v1086_v52, %v2070_v59  ;;  %v1088_v56 = vpop.f32.mrb[21].mxu0  ;;  %v1580_v52 = vpack.c.bf16 %v1250_v47, %v1249_v45 }
0x11bd   : > { %v1090_v58 = vpop.f32.mrb[22].mxu0  ;;  %v1251_v56 = vld [vmem:[%s2227_s4 + $0x10] sm:$0xff] }
0x11be   : > { %1741 = vtanh.f32 %v1097_v54  ;;  %v1092_v51 = vpop.f32.mrb[23].mxu0  ;;  %v1531_v48 = vmul.f32 -1.442695, %v1097_v54  ;;  %v1254_v54 = vld [vmem:[%s2227_s4 + $0x28] sm:$0xff]  ;;  %v1252_v58 = vld [vmem:[%s2227_s4 + $0x18] sm:$0xff] }
0x11bf   : > { %v1098_v34 = vadd.f32 %v1092_v51, %v2051_v38  ;;  %v1574_v51 = vpack.c.bf16 %v1254_v54, %v1253_v49 }
0x11c1   : > { %1743 = vtanh.f32 %v1098_v34  ;;  %v1532_v61 = vmul.f32 -1.442695, %v1098_v34  ;;  %v1255_v34 = vld [vmem:[%s2227_s4 + $0x30] sm:$0xff]  ;;  %1575 = vmatpush3.bf16.msra.mxu0 %v1574_v51 }
0x11c2   : > { %1745 = vpow2.f32 %v1531_v48  ;;  %v1583_v48 = vpack.c.bf16 %v1252_v58, %v1251_v56  ;;  %1576 = vmatprep.subr.bf16.mxu0 %v1850_v50 }
0x11c3   : > { %1747 = vpow2.f32 %v1532_v61 }
0x11c8   : > { %v1742_v60 = vpop.eup %1741 }
0x11c9   : > { %1117 = vrot.lane.b32.xlu0 %v1742_v60, %s1848_s20  ;;  %v1256_v60 = vld [vmem:[%s2227_s4 + $0x38] sm:$0xff] }
0x11ca   : > { %v1577_v61 = vpack.c.bf16 %v1256_v60, %v1255_v34 }
0x11cb   : > { %v1744_v62 = vpop.eup %1743 }
0x11cc   : > { %1119 = vrot.lane.b32.xlu1 %v1744_v62, %s1848_s20  ;;  %v1746_v1 = vpop.eup %1745  ;;  %v1852_v62 = vmov 0.0   ;;  %1578 = vmatpush3.bf16.msra.mxu0 %v1577_v61 }
0x11cd   : > { %v1748_v2 = vpop.eup %1747  ;;  %v1105_v59 = vadd.f32 1.0, %v1746_v1  ;;  %1559 = vmatprep.mubr.msk.f32.mxu0 %vm1851_vm1, %v1852_v62 }
0x11ce   : > { %v1106_v5 = vadd.f32 1.0, %v1748_v2 }
0x11cf   : > { %1749 = vrcp.f32 %v1105_v59 }
0x11d0   : > { %1751 = vrcp.f32 %v1106_v5 }
0x11d9   : > { %v1750_v6 = vpop.eup %1749 }
0x11da   : > { %v1752_v10 = vpop.eup %1751  ;;  %v1113_v13 = vmul.f32 %v1750_v6, %v1031_v42 }
0x11db   : > { %v1114_v16 = vmul.f32 %v1752_v10, %v1032_v39 }
0x123b   : > { %v1118_v9 = vpop.permute.xlu0 %1117 }
0x123c   : > { %v1123_v38 = vmul.f32 %v1750_v6, %v1118_v9 }
0x123e   : > { %1127 = vrot.lane.b32.xlu0 %v1123_v38, %s1849_s24  ;;  %v1120_v11 = vpop.permute.xlu1 %1119 }
0x123f   : > { %v1124_v12 = vmul.f32 %v1752_v10, %v1120_v11 }
0x1241   : > { %1129 = vrot.lane.b32.xlu1 %v1124_v12, %s1849_s24 }
0x12b0   : > { %v1128_v14 = vpop.permute.xlu0 %1127 }
0x12b1   : > { %v1133_v15 = vadd.f32 %v1128_v14, %v1113_v13  ;;  %v1538_v14 = vld [vmem:[%s2228_s5] ss:$0 sm:$0xff] }
0x12b3   : > { %1753 = vtanh.f32 %v1133_v15  ;;  %v1130_v3 = vpop.permute.xlu1 %1129 }
0x12b4   : > { %v1134_v17 = vadd.f32 %v1130_v3, %v1114_v16 }
0x12b6   : > { %1755 = vtanh.f32 %v1134_v17 }
0x12bd   : > { %v1754_v46 = vpop.eup %1753 }
0x12be   : > { %1139 = vrot.lane.b32.xlu0 %v1754_v46, %s1848_s20 }
0x12c0   : > { %v1756_v18 = vpop.eup %1755 }
0x12c1   : > { %1141 = vrot.lane.b32.xlu1 %v1756_v18, %s1848_s20 }
0x1330   : > { %v1140_v19 = vpop.permute.xlu0 %1139 }
0x1331   : > { %v1145_v53 = vmul.f32 %v1750_v6, %v1140_v19 }
0x1333   : > { %v1142_v20 = vpop.permute.xlu1 %1141 }
0x1334   : > { %v1146_v21 = vmul.f32 %v1752_v10, %v1142_v20 }
0x1336   : > { %v1147_v22 = vpack.c.bf16 %v1146_v21, %v1145_v53 }
0x1338   : > { %1149 = vrot.lane.b32.xlu0 %v1147_v22, %s1849_s24 }
0x13aa   : > { %v1150_v23 = vpop.permute.xlu0 %1149 }
0x13ab   : > { %1533 = vmatmul.mubr.msk.bf16.vlgmr.msra.gmra.mrb[20].mxu1 %vm322_vm0, %v1150_v23 }
0x13ac   : > { %1570 = vmatprep.mubr.msk.f32.mxu1 %vm1851_vm1, %v1852_v62  ;;  %1581 = vmatpush3.bf16.msra.mxu1 %v1580_v52 }
0x13ad   : > { %1582 = vmatprep.subr.bf16.mxu1 %v1850_v50 }
0x13b0   : > { %1584 = vmatpush3.bf16.msra.mxu1 %v1583_v48 }
0x147e   : > { %v1188_v24 = vpop.f32.mrb[20].mxu1 }
0x147f   : > { %v1199_v4 = vadd.f32 %v1188_v24, %v2072_v63  ;;  %v1190_v0 = vpop.f32.mrb[21].mxu1 }
0x1480   : > { %v1192_v7 = vpop.f32.mrb[22].mxu1 }
0x1481   : > { %1757 = vtanh.f32 %v1199_v4  ;;  %v1194_v8 = vpop.f32.mrb[23].mxu1  ;;  %v1534_v27 = vmul.f32 -1.442695, %v1199_v4 }
0x1482   : > { %v1200_v25 = vadd.f32 %v1194_v8, %v2047_v31 }
0x1484   : > { %1759 = vtanh.f32 %v1200_v25  ;;  %v1535_v28 = vmul.f32 -1.442695, %v1200_v25 }
0x1485   : > { %1761 = vpow2.f32 %v1534_v27 }
0x1486   : > { %1763 = vpow2.f32 %v1535_v28 }
0x148b   : > { %v1758_v55 = vpop.eup %1757 }
0x148c   : > { %1219 = vrot.lane.b32.xlu1 %v1758_v55, %s1848_s20 }
0x148e   : > { %v1760_v26 = vpop.eup %1759 }
0x148f   : > { %1221 = vrot.lane.b32.xlu0 %v1760_v26, %s1848_s20  ;;  %v1762_v44 = vpop.eup %1761 }
0x1490   : > { %v1764_v29 = vpop.eup %1763  ;;  %v1207_v63 = vadd.f32 1.0, %v1762_v44 }
0x1491   : > { %v1208_v30 = vadd.f32 1.0, %v1764_v29 }
0x1492   : > { %1765 = vrcp.f32 %v1207_v63 }
0x1493   : > { %1767 = vrcp.f32 %v1208_v30 }
0x149c   : > { %v1766_v32 = vpop.eup %1765 }
0x149d   : > { %v1768_v35 = vpop.eup %1767  ;;  %v1215_v37 = vmul.f32 %v1766_v32, %v1133_v15 }
0x149e   : > { %v1216_v40 = vmul.f32 %v1768_v35, %v1134_v17 }
0x14fe   : > { %v1220_v33 = vpop.permute.xlu1 %1219 }
0x14ff   : > { %v1225_v31 = vmul.f32 %v1766_v32, %v1220_v33 }
0x1501   : > { %1229 = vrot.lane.b32.xlu1 %v1225_v31, %s1849_s24  ;;  %v1222_v42 = vpop.permute.xlu0 %1221 }
0x1502   : > { %v1226_v36 = vmul.f32 %v1768_v35, %v1222_v42 }
0x1504   : > { %1231 = vrot.lane.b32.xlu0 %v1226_v36, %s1849_s24 }
0x1573   : > { %v1230_v39 = vpop.permute.xlu1 %1229 }
0x1574   : > { %v1235_v57 = vadd.f32 %v1230_v39, %v1215_v37 }
0x1576   : > { %1769 = vtanh.f32 %v1235_v57  ;;  %v1232_v41 = vpop.permute.xlu0 %1231 }
0x1577   : > { %v1236_v43 = vadd.f32 %v1232_v41, %v1216_v40 }
0x1579   : > { %1771 = vtanh.f32 %v1236_v43 }
0x1580   : > { %v1770_v1 = vpop.eup %1769 }
0x1581   : > { %1241 = vrot.lane.b32.xlu1 %v1770_v1, %s1848_s20 }
0x1583   : > { %v1772_v2 = vpop.eup %1771 }
0x1584   : > { %1243 = vrot.lane.b32.xlu0 %v1772_v2, %s1848_s20 }
0x15f3   : > { %v1242_v59 = vpop.permute.xlu1 %1241 }
0x15f4   : > { %v1247_v5 = vmul.f32 %v1766_v32, %v1242_v59 }
0x15f6   : > { %1333 = vrot.lane.b32.xlu0 %v1247_v5, %s1849_s24  ;;  %v1244_v6 = vpop.permute.xlu0 %1243 }
0x15f7   : > { %v1248_v9 = vmul.f32 %v1768_v35, %v1244_v6 }
0x15f9   : > { %1258 = vrot.lane.b32.xlu1 %v1248_v9, %s1849_s24  ;;  %s1500_s24 = sshll.u32 %s2237_s25, 3 }
0x15fa   : > { %s268_s15 = scalar_lea.vmem %s2229_s6, %s1500_s24 }
0x1668   : > { %v1334_v38 = vpop.permute.xlu0 %1333 }
0x1669   : > { %1571 = vmatmul.mubr.msk.f32.vlgmr.msra.gmra.mrb[24].mxu1 %vm322_vm0, %v1334_v38 }
0x166b   : > { %v1259_v10 = vpop.permute.xlu1 %1258 }
0x166c   : > { %1560 = vmatmul.mubr.msk.f32.vlgmr.msra.gmra.mrb[24].mxu0 %vm322_vm0, %v1259_v10 }
0x173c   : > { %v1403_v11 = vpop.f32.mrb[24].mxu1 }
0x173d   : > { %v1572_v12 = vpop.f32.mrb[25].mxu1 }
0x173f   : > { %v1328_v13 = vpop.f32.mrb[24].mxu0 }
0x1740   : > { %v1404_v15 = vadd.f32 %v1403_v11, %v1328_v13  ;;  %v1561_v16 = vpop.f32.mrb[25].mxu0 }
0x1742   : > { %v1414_v3 = vadd.f32 %v1538_v14, %v1404_v15 }
0x1744   : > { %v1416_v17 = vsel %vm1415_vm2, %v1414_v3, -inf }
0x1745   : > { %1417 = vmax.xlane.f32.xlu1 %v1416_v17 }
0x17d2   : > { %v1418_v46 = vpop.xlane.xlu1 %1417 }
0x17d3   : > { %v1419_v18 = vsub.f32 %v1414_v3, %v1418_v46 }
0x17d5   : > { %v1420_v19 = vmul.f32 1.442695, %v1419_v18 }
0x17d7   : > { %1773 = vpow2.f32 %v1420_v19 }
0x17e1   : > { %v1774_v20 = vpop.eup %1773 }
0x17e2   : > { %v1422_v53 = vsel %vm1415_vm2, %v1774_v20, 0.0 }
0x17e3   : > { %1423 = vadd.xlane.f32.xlu0 %v1422_v53 }
0x1870   : > { %v1424_v21 = vpop.xlane.xlu0 %1423 }
0x1871   : > { %1775 = vrcp.f32 %v1424_v21 }
0x187b   : > { %v1776_v22 = vpop.eup %1775 }
0x187c   : > { %v1426_v23 = vmul.f32 %v1776_v22, %v1774_v20 }
0x187e   : > { %1427 = vst.msk [vmem:[%s268_s15] sm:$0xff] %vm1415_vm2, %v1426_v23 }
0x187f PF: > { %p16_p8 = scmp.ge.s32.totalorder %s1910_s26, 4   ;;  %s2232_s21 = smov %s1833_s22 }
0x1880   : > { %s2233_s22 = smov %s1837_s23  ;;  %s2234_s23 = smov %s1920_s29 }
0x1881   : > { %s2235_s24 = smov %s1910_s26  ;;  %18 = sbr.rel (!%p16_p8) target bundleno = 3 (0x3), region = 84 }
0x1888   :  { %1447 = vsyncpa [#allocation3], 1 }
0x1889   :  { %1449 = vsyncpa [#allocation3 + $0x1], 1 }

</bundles_post_ra>
